<compile_context>
chip_gen: v7x
topology: tpu7x:2x2x1
jax: 0.10.0
libtpu: 0.0.40
codegen_flags: <defaults>
</compile_context>

<pallas_src>
import functools

import jax
import jax.numpy as jnp
from jax import lax
from jax.experimental import pallas as pl
from jax.experimental.pallas import tpu as pltpu


def block_kernel(x_ref, w_ref, m_ref, gm_ref, b_ref, g_ref, be_ref, o_ref,
                 xext_ref, slab_ref, *, D, H, W, Cin, Cout, eps, pad):
    """One grid step = one batch element. Spatial is flattened onto the lane axis.

    x_ref:    (1, Cin, DHW)    flattened input (channels on sublanes)
    w_ref:    (Cout, 27*Cin)   conv weight, tap-major K (k = kd*9 + kh*3 + kw)
    m_ref:    (27, DHW)        per-tap halo validity masks (float32 0/1)
    gm_ref:   (Cout, Cout)     group-average matrix: 1/(Cpg*DHW) within a group, else 0
    b_ref, g_ref, be_ref: (Cout, 1)  conv bias / GN gamma / GN beta
    o_ref:    (1, Cout, DHW)   output (lane-dense store)
    xext_ref: (Cin, EXT)       zero-extended flat input (VMEM scratch)
    slab_ref: (27*Cin, DHW)    im2col slab (VMEM scratch)
    """
    DHW = D * H * W

    # --- extended flat input: lanes [pad, pad+DHW) hold x, both margins are zero ---
    xext_ref[...] = jnp.zeros_like(xext_ref)
    xext_ref[:, pad:pad + DHW] = x_ref[0].astype(jnp.float32)
    xe = xext_ref[...]                                   # (Cin, EXT), ~6 vregs

    # --- build im2col slab: 27 lane-shifted, halo-masked copies stacked along K ---
    k = 0
    for kd in range(3):
        for kh in range(3):
            for kw in range(3):
                delta = (kd - 1) * H * W + (kh - 1) * W + (kw - 1)
                win = xe[:, pad + delta:pad + delta + DHW]           # (Cin, DHW) lane shift
                slab_ref[k * Cin:(k + 1) * Cin, :] = win * m_ref[k:k + 1, :]
                k += 1

    # --- Conv3d as a single deep-K MXU matmul + bias ---
    acc = jnp.dot(w_ref[...].astype(jnp.float32), slab_ref[...],
                  preferred_element_type=jnp.float32)                # (Cout, DHW)
    acc = acc + b_ref[...].astype(jnp.float32)

    # --- GroupNorm: two-pass (group mean, then centered biased variance) ---
    s1 = jnp.sum(acc, axis=1, keepdims=True)                         # (Cout, 1)
    mean_c = jnp.dot(gm_ref[...], s1, preferred_element_type=jnp.float32)
    xc = acc - mean_c
    s2 = jnp.sum(xc * xc, axis=1, keepdims=True)                     # (Cout, 1)
    var_c = jnp.dot(gm_ref[...], s2, preferred_element_type=jnp.float32)
    y = xc * lax.rsqrt(var_c + eps)
    y = y * g_ref[...].astype(jnp.float32) + be_ref[...].astype(jnp.float32)

    # --- SiLU + lane-dense store ---
    y = y * jax.nn.sigmoid(y)
    o_ref[0] = y.astype(o_ref.dtype)


def block_forward(x_ncdhw, weight, bias, gamma, beta, *, groups=8, eps=1e-5):
    """x_ncdhw: (N, Cin, D, H, W) float32; weight: (Cout, Cin, 3, 3, 3)."""
    N, Cin, D, H, W = x_ncdhw.shape
    Cout = weight.shape[0]
    Cpg = Cout // groups
    DHW = D * H * W
    PAD = pl.cdiv(H * W + W + 1, 128) * 128              # covers max |tap offset|
    EXT = PAD + DHW + PAD

    # Glue (plain JAX, no transpose/pad materialization of the activations):
    x3 = x_ncdhw.reshape(N, Cin, DHW)                                 # channels on sublanes
    w2 = jnp.transpose(weight, (0, 2, 3, 4, 1)).reshape(Cout, 27 * Cin)
    b2 = bias.reshape(Cout, 1)
    g2 = gamma.reshape(Cout, 1)
    be2 = beta.reshape(Cout, 1)

    # Per-tap halo validity masks (static function of the shapes only).
    lin = jnp.arange(DHW, dtype=jnp.int32)
    d_i = lin // (H * W)
    h_i = (lin // W) % H
    w_i = lin % W
    masks = []
    for kd in range(3):
        for kh in range(3):
            for kw in range(3):
                a, b, c = kd - 1, kh - 1, kw - 1
                ok = ((d_i + a >= 0) & (d_i + a < D) &
                      (h_i + b >= 0) & (h_i + b < H) &
                      (w_i + c >= 0) & (w_i + c < W))
                masks.append(ok)
    masks = jnp.stack(masks, axis=0).astype(jnp.float32)              # (27, DHW)

    # Group-average matrix: gm[c, c'] = 1/(Cpg*DHW) if same group else 0.
    cidx = jnp.arange(Cout, dtype=jnp.int32)
    gm = ((cidx[:, None] // Cpg) == (cidx[None, :] // Cpg)).astype(jnp.float32)
    gm = gm / jnp.float32(Cpg * DHW)                                  # (Cout, Cout)

    kern = functools.partial(block_kernel, D=D, H=H, W=W, Cin=Cin, Cout=Cout,
                             eps=eps, pad=PAD)

    out3 = pl.pallas_call(
        kern,
        out_shape=jax.ShapeDtypeStruct((N, Cout, DHW), x_ncdhw.dtype),
        grid_spec=pltpu.PrefetchScalarGridSpec(
            num_scalar_prefetch=0,
            grid=(N,),
            in_specs=[
                pl.BlockSpec((1, Cin, DHW), lambda n: (n, 0, 0)),
                pl.BlockSpec((Cout, 27 * Cin), lambda n: (0, 0)),
                pl.BlockSpec((27, DHW), lambda n: (0, 0)),
                pl.BlockSpec((Cout, Cout), lambda n: (0, 0)),
                pl.BlockSpec((Cout, 1), lambda n: (0, 0)),
                pl.BlockSpec((Cout, 1), lambda n: (0, 0)),
                pl.BlockSpec((Cout, 1), lambda n: (0, 0)),
            ],
            out_specs=pl.BlockSpec((1, Cout, DHW), lambda n: (n, 0, 0)),
            scratch_shapes=[
                pltpu.VMEM((Cin, EXT), jnp.float32),
                pltpu.VMEM((27 * Cin, DHW), jnp.float32),
            ],
        ),
        compiler_params=pltpu.CompilerParams(dimension_semantics=("parallel",)),
    )(x3, w2, masks, gm, b2, g2, be2)

    return out3.reshape(N, Cout, D, H, W)


def reference_block(x, weight, bias, gamma, beta, *, groups=8, eps=1e-5):
    """Pure-JAX reference matching the PyTorch module (NCDHW)."""
    y = lax.conv_general_dilated(
        x, weight, window_strides=(1, 1, 1),
        padding=((1, 1), (1, 1), (1, 1)),
        dimension_numbers=("NCDHW", "OIDHW", "NCDHW"))
    y = y + bias.reshape(1, -1, 1, 1, 1)
    N, C, D, H, W = y.shape
    yg = y.reshape(N, groups, C // groups, D, H, W)
    mean = yg.mean(axis=(2, 3, 4, 5), keepdims=True)
    var = yg.var(axis=(2, 3, 4, 5), keepdims=True)
    yn = ((yg - mean) / jnp.sqrt(var + eps)).reshape(N, C, D, H, W)
    yn = yn * gamma.reshape(1, -1, 1, 1, 1) + beta.reshape(1, -1, 1, 1, 1)
    return yn * jax.nn.sigmoid(yn)


if __name__ == "__main__":
    # Small shapes consistent with Block(dim=8, dim_out=16, groups=8)
    N, Cin, Cout, groups = 2, 8, 16, 8
    D = H = W = 8

    key = jax.random.PRNGKey(0)
    kx, kw, kb = jax.random.split(key, 3)
    x = jax.random.normal(kx, (N, Cin, D, H, W), jnp.float32)
    # Deterministic parameter init (synthetic; matches __init__ shapes, not a checkpoint).
    weight = 0.1 * jax.random.normal(kw, (Cout, Cin, 3, 3, 3), jnp.float32)
    bias = 0.05 * jax.random.normal(kb, (Cout,), jnp.float32)
    gamma = jnp.ones((Cout,), jnp.float32)   # GroupNorm default affine init
    beta = jnp.zeros((Cout,), jnp.float32)

    out = block_forward(x, weight, bias, gamma, beta, groups=groups)
    out = jax.block_until_ready(out)

    ref = reference_block(x, weight, bias, gamma, beta, groups=groups)
    assert out.shape == (N, Cout, D, H, W)
    assert jnp.allclose(out, ref, atol=1e-3, rtol=1e-3), "mismatch vs reference"

    print("KERNEL_OK")
</pallas_src>

<mosaic_0001>
module attributes {stable_mosaic.version = 11 : i64} {
  func.func @block_kernel(%arg0: i32, %arg1: memref<1x8x512xf32, #tpu.memory_space<vmem>>, %arg2: memref<16x216xf32, #tpu.memory_space<vmem>>, %arg3: memref<27x512xf32, #tpu.memory_space<vmem>>, %arg4: memref<16x16xf32, #tpu.memory_space<vmem>>, %arg5: memref<16x1xf32, #tpu.memory_space<vmem>>, %arg6: memref<16x1xf32, #tpu.memory_space<vmem>>, %arg7: memref<16x1xf32, #tpu.memory_space<vmem>>, %arg8: memref<1x16x512xf32, #tpu.memory_space<vmem>>, %arg9: memref<8x768xf32, #tpu.memory_space<vmem>>, %arg10: memref<216x512xf32, #tpu.memory_space<vmem>>) attributes {dimension_semantics = [#tpu.dimension_semantics<parallel>], iteration_bounds = array<i64: 2>, scalar_prefetch = 0 : i64, scratch_operands = 2 : i64, tpu.core_type = #tpu.core_type<tc>, window_params = [{transform_indices = @transform_0, window_bounds = array<i64: 1, 8, 512>}, {pipeline_mode = #tpu.pipeline_mode<synchronous>, transform_indices = @transform_1, window_bounds = array<i64: 16, 216>}, {pipeline_mode = #tpu.pipeline_mode<synchronous>, transform_indices = @transform_2, window_bounds = array<i64: 27, 512>}, {pipeline_mode = #tpu.pipeline_mode<synchronous>, transform_indices = @transform_3, window_bounds = array<i64: 16, 16>}, {pipeline_mode = #tpu.pipeline_mode<synchronous>, transform_indices = @transform_4, window_bounds = array<i64: 16, 1>}, {pipeline_mode = #tpu.pipeline_mode<synchronous>, transform_indices = @transform_5, window_bounds = array<i64: 16, 1>}, {pipeline_mode = #tpu.pipeline_mode<synchronous>, transform_indices = @transform_6, window_bounds = array<i64: 16, 1>}, {transform_indices = @transform_7, window_bounds = array<i64: 1, 16, 512>}]} {
    %cst = arith.constant 0.000000e+00 : f32
    %0 = vector.broadcast %cst : f32 to vector<8x768xf32>
    %c0 = arith.constant 0 : index
    %c0_0 = arith.constant 0 : index
    %1 = vector.load %arg9[%c0, %c0_0] : memref<8x768xf32, #tpu.memory_space<vmem>>, vector<8x768xf32>
    tpu.vector_store %arg9[%c0, %c0_0], %0 {strides = array<i32>} : memref<8x768xf32, #tpu.memory_space<vmem>>, vector<8x768xf32>,
    %c0_1 = arith.constant 0 : index
    %c0_2 = arith.constant 0 : index
    %c0_3 = arith.constant 0 : index
    %2 = vector.load %arg1[%c0_1, %c0_2, %c0_3] : memref<1x8x512xf32, #tpu.memory_space<vmem>>, vector<1x8x512xf32>
    %3 = vector.shape_cast %2 : vector<1x8x512xf32> to vector<8x512xf32>
    %c0_4 = arith.constant 0 : index
    %c128 = arith.constant 128 : index
    %4 = vector.load %arg9[%c0_4, %c128] : memref<8x768xf32, #tpu.memory_space<vmem>>, vector<8x512xf32>
    tpu.vector_store %arg9[%c0_4, %c128], %3 {strides = array<i32>} : memref<8x768xf32, #tpu.memory_space<vmem>>, vector<8x512xf32>,
    %c0_5 = arith.constant 0 : index
    %c0_6 = arith.constant 0 : index
    %5 = vector.load %arg9[%c0_5, %c0_6] : memref<8x768xf32, #tpu.memory_space<vmem>>, vector<8x768xf32>
    %6 = vector.extract_strided_slice %5 {offsets = [0, 55], sizes = [8, 512], strides = [1, 1]} : vector<8x768xf32> to vector<8x512xf32>
    %c0_7 = arith.constant 0 : index
    %c0_8 = arith.constant 0 : index
    %7 = vector.load %arg3[%c0_7, %c0_8] : memref<27x512xf32, #tpu.memory_space<vmem>>, vector<1x512xf32>
    %8 = vector.broadcast %7 : vector<1x512xf32> to vector<8x512xf32>
    %9 = arith.mulf %6, %8 : vector<8x512xf32>
    %c0_9 = arith.constant 0 : index
    %c0_10 = arith.constant 0 : index
    %10 = vector.load %arg10[%c0_9, %c0_10] : memref<216x512xf32, #tpu.memory_space<vmem>>, vector<8x512xf32>
    tpu.vector_store %arg10[%c0_9, %c0_10], %9 {strides = array<i32>} : memref<216x512xf32, #tpu.memory_space<vmem>>, vector<8x512xf32>,
    %11 = vector.extract_strided_slice %5 {offsets = [0, 56], sizes = [8, 512], strides = [1, 1]} : vector<8x768xf32> to vector<8x512xf32>
    %c1 = arith.constant 1 : index
    %c0_11 = arith.constant 0 : index
    %12 = vector.load %arg3[%c1, %c0_11] : memref<27x512xf32, #tpu.memory_space<vmem>>, vector<1x512xf32>
    %13 = vector.broadcast %12 : vector<1x512xf32> to vector<8x512xf32>
    %14 = arith.mulf %11, %13 : vector<8x512xf32>
    %c8 = arith.constant 8 : index
    %c0_12 = arith.constant 0 : index
    %15 = vector.load %arg10[%c8, %c0_12] : memref<216x512xf32, #tpu.memory_space<vmem>>, vector<8x512xf32>
    tpu.vector_store %arg10[%c8, %c0_12], %14 {strides = array<i32>} : memref<216x512xf32, #tpu.memory_space<vmem>>, vector<8x512xf32>,
    %16 = vector.extract_strided_slice %5 {offsets = [0, 57], sizes = [8, 512], strides = [1, 1]} : vector<8x768xf32> to vector<8x512xf32>
    %c2 = arith.constant 2 : index
    %c0_13 = arith.constant 0 : index
    %17 = vector.load %arg3[%c2, %c0_13] : memref<27x512xf32, #tpu.memory_space<vmem>>, vector<1x512xf32>
    %18 = vector.broadcast %17 : vector<1x512xf32> to vector<8x512xf32>
    %19 = arith.mulf %16, %18 : vector<8x512xf32>
    %c16 = arith.constant 16 : index
    %c0_14 = arith.constant 0 : index
    %20 = vector.load %arg10[%c16, %c0_14] : memref<216x512xf32, #tpu.memory_space<vmem>>, vector<8x512xf32>
    tpu.vector_store %arg10[%c16, %c0_14], %19 {strides = array<i32>} : memref<216x512xf32, #tpu.memory_space<vmem>>, vector<8x512xf32>,
    %21 = vector.extract_strided_slice %5 {offsets = [0, 63], sizes = [8, 512], strides = [1, 1]} : vector<8x768xf32> to vector<8x512xf32>
    %c3 = arith.constant 3 : index
    %c0_15 = arith.constant 0 : index
    %22 = vector.load %arg3[%c3, %c0_15] : memref<27x512xf32, #tpu.memory_space<vmem>>, vector<1x512xf32>
    %23 = vector.broadcast %22 : vector<1x512xf32> to vector<8x512xf32>
    %24 = arith.mulf %21, %23 : vector<8x512xf32>
    %c24 = arith.constant 24 : index
    %c0_16 = arith.constant 0 : index
    %25 = vector.load %arg10[%c24, %c0_16] : memref<216x512xf32, #tpu.memory_space<vmem>>, vector<8x512xf32>
    tpu.vector_store %arg10[%c24, %c0_16], %24 {strides = array<i32>} : memref<216x512xf32, #tpu.memory_space<vmem>>, vector<8x512xf32>,
    %26 = vector.extract_strided_slice %5 {offsets = [0, 64], sizes = [8, 512], strides = [1, 1]} : vector<8x768xf32> to vector<8x512xf32>
    %c4 = arith.constant 4 : index
    %c0_17 = arith.constant 0 : index
    %27 = vector.load %arg3[%c4, %c0_17] : memref<27x512xf32, #tpu.memory_space<vmem>>, vector<1x512xf32>
    %28 = vector.broadcast %27 : vector<1x512xf32> to vector<8x512xf32>
    %29 = arith.mulf %26, %28 : vector<8x512xf32>
    %c32 = arith.constant 32 : index
    %c0_18 = arith.constant 0 : index
    %30 = vector.load %arg10[%c32, %c0_18] : memref<216x512xf32, #tpu.memory_space<vmem>>, vector<8x512xf32>
    tpu.vector_store %arg10[%c32, %c0_18], %29 {strides = array<i32>} : memref<216x512xf32, #tpu.memory_space<vmem>>, vector<8x512xf32>,
    %31 = vector.extract_strided_slice %5 {offsets = [0, 65], sizes = [8, 512], strides = [1, 1]} : vector<8x768xf32> to vector<8x512xf32>
    %c5 = arith.constant 5 : index
    %c0_19 = arith.constant 0 : index
    %32 = vector.load %arg3[%c5, %c0_19] : memref<27x512xf32, #tpu.memory_space<vmem>>, vector<1x512xf32>
    %33 = vector.broadcast %32 : vector<1x512xf32> to vector<8x512xf32>
    %34 = arith.mulf %31, %33 : vector<8x512xf32>
    %c40 = arith.constant 40 : index
    %c0_20 = arith.constant 0 : index
    %35 = vector.load %arg10[%c40, %c0_20] : memref<216x512xf32, #tpu.memory_space<vmem>>, vector<8x512xf32>
    tpu.vector_store %arg10[%c40, %c0_20], %34 {strides = array<i32>} : memref<216x512xf32, #tpu.memory_space<vmem>>, vector<8x512xf32>,
    %36 = vector.extract_strided_slice %5 {offsets = [0, 71], sizes = [8, 512], strides = [1, 1]} : vector<8x768xf32> to vector<8x512xf32>
    %c6 = arith.constant 6 : index
    %c0_21 = arith.constant 0 : index
    %37 = vector.load %arg3[%c6, %c0_21] : memref<27x512xf32, #tpu.memory_space<vmem>>, vector<1x512xf32>
    %38 = vector.broadcast %37 : vector<1x512xf32> to vector<8x512xf32>
    %39 = arith.mulf %36, %38 : vector<8x512xf32>
    %c48 = arith.constant 48 : index
    %c0_22 = arith.constant 0 : index
    %40 = vector.load %arg10[%c48, %c0_22] : memref<216x512xf32, #tpu.memory_space<vmem>>, vector<8x512xf32>
    tpu.vector_store %arg10[%c48, %c0_22], %39 {strides = array<i32>} : memref<216x512xf32, #tpu.memory_space<vmem>>, vector<8x512xf32>,
    %41 = vector.extract_strided_slice %5 {offsets = [0, 72], sizes = [8, 512], strides = [1, 1]} : vector<8x768xf32> to vector<8x512xf32>
    %c7 = arith.constant 7 : index
    %c0_23 = arith.constant 0 : index
    %42 = vector.load %arg3[%c7, %c0_23] : memref<27x512xf32, #tpu.memory_space<vmem>>, vector<1x512xf32>
    %43 = vector.broadcast %42 : vector<1x512xf32> to vector<8x512xf32>
    %44 = arith.mulf %41, %43 : vector<8x512xf32>
    %c56 = arith.constant 56 : index
    %c0_24 = arith.constant 0 : index
    %45 = vector.load %arg10[%c56, %c0_24] : memref<216x512xf32, #tpu.memory_space<vmem>>, vector<8x512xf32>
    tpu.vector_store %arg10[%c56, %c0_24], %44 {strides = array<i32>} : memref<216x512xf32, #tpu.memory_space<vmem>>, vector<8x512xf32>,
    %46 = vector.extract_strided_slice %5 {offsets = [0, 73], sizes = [8, 512], strides = [1, 1]} : vector<8x768xf32> to vector<8x512xf32>
    %c8_25 = arith.constant 8 : index
    %c0_26 = arith.constant 0 : index
    %47 = vector.load %arg3[%c8_25, %c0_26] : memref<27x512xf32, #tpu.memory_space<vmem>>, vector<1x512xf32>
    %48 = vector.broadcast %47 : vector<1x512xf32> to vector<8x512xf32>
    %49 = arith.mulf %46, %48 : vector<8x512xf32>
    %c64 = arith.constant 64 : index
    %c0_27 = arith.constant 0 : index
    %50 = vector.load %arg10[%c64, %c0_27] : memref<216x512xf32, #tpu.memory_space<vmem>>, vector<8x512xf32>
    tpu.vector_store %arg10[%c64, %c0_27], %49 {strides = array<i32>} : memref<216x512xf32, #tpu.memory_space<vmem>>, vector<8x512xf32>,
    %51 = vector.extract_strided_slice %5 {offsets = [0, 119], sizes = [8, 512], strides = [1, 1]} : vector<8x768xf32> to vector<8x512xf32>
    %c9 = arith.constant 9 : index
    %c0_28 = arith.constant 0 : index
    %52 = vector.load %arg3[%c9, %c0_28] : memref<27x512xf32, #tpu.memory_space<vmem>>, vector<1x512xf32>
    %53 = vector.broadcast %52 : vector<1x512xf32> to vector<8x512xf32>
    %54 = arith.mulf %51, %53 : vector<8x512xf32>
    %c72 = arith.constant 72 : index
    %c0_29 = arith.constant 0 : index
    %55 = vector.load %arg10[%c72, %c0_29] : memref<216x512xf32, #tpu.memory_space<vmem>>, vector<8x512xf32>
    tpu.vector_store %arg10[%c72, %c0_29], %54 {strides = array<i32>} : memref<216x512xf32, #tpu.memory_space<vmem>>, vector<8x512xf32>,
    %56 = vector.extract_strided_slice %5 {offsets = [0, 120], sizes = [8, 512], strides = [1, 1]} : vector<8x768xf32> to vector<8x512xf32>
    %c10 = arith.constant 10 : index
    %c0_30 = arith.constant 0 : index
    %57 = vector.load %arg3[%c10, %c0_30] : memref<27x512xf32, #tpu.memory_space<vmem>>, vector<1x512xf32>
    %58 = vector.broadcast %57 : vector<1x512xf32> to vector<8x512xf32>
    %59 = arith.mulf %56, %58 : vector<8x512xf32>
    %c80 = arith.constant 80 : index
    %c0_31 = arith.constant 0 : index
    %60 = vector.load %arg10[%c80, %c0_31] : memref<216x512xf32, #tpu.memory_space<vmem>>, vector<8x512xf32>
    tpu.vector_store %arg10[%c80, %c0_31], %59 {strides = array<i32>} : memref<216x512xf32, #tpu.memory_space<vmem>>, vector<8x512xf32>,
    %61 = vector.extract_strided_slice %5 {offsets = [0, 121], sizes = [8, 512], strides = [1, 1]} : vector<8x768xf32> to vector<8x512xf32>
    %c11 = arith.constant 11 : index
    %c0_32 = arith.constant 0 : index
    %62 = vector.load %arg3[%c11, %c0_32] : memref<27x512xf32, #tpu.memory_space<vmem>>, vector<1x512xf32>
    %63 = vector.broadcast %62 : vector<1x512xf32> to vector<8x512xf32>
    %64 = arith.mulf %61, %63 : vector<8x512xf32>
    %c88 = arith.constant 88 : index
    %c0_33 = arith.constant 0 : index
    %65 = vector.load %arg10[%c88, %c0_33] : memref<216x512xf32, #tpu.memory_space<vmem>>, vector<8x512xf32>
    tpu.vector_store %arg10[%c88, %c0_33], %64 {strides = array<i32>} : memref<216x512xf32, #tpu.memory_space<vmem>>, vector<8x512xf32>,
    %66 = vector.extract_strided_slice %5 {offsets = [0, 127], sizes = [8, 512], strides = [1, 1]} : vector<8x768xf32> to vector<8x512xf32>
    %c12 = arith.constant 12 : index
    %c0_34 = arith.constant 0 : index
    %67 = vector.load %arg3[%c12, %c0_34] : memref<27x512xf32, #tpu.memory_space<vmem>>, vector<1x512xf32>
    %68 = vector.broadcast %67 : vector<1x512xf32> to vector<8x512xf32>
    %69 = arith.mulf %66, %68 : vector<8x512xf32>
    %c96 = arith.constant 96 : index
    %c0_35 = arith.constant 0 : index
    %70 = vector.load %arg10[%c96, %c0_35] : memref<216x512xf32, #tpu.memory_space<vmem>>, vector<8x512xf32>
    tpu.vector_store %arg10[%c96, %c0_35], %69 {strides = array<i32>} : memref<216x512xf32, #tpu.memory_space<vmem>>, vector<8x512xf32>,
    %71 = vector.extract_strided_slice %5 {offsets = [0, 128], sizes = [8, 512], strides = [1, 1]} : vector<8x768xf32> to vector<8x512xf32>
    %c13 = arith.constant 13 : index
    %c0_36 = arith.constant 0 : index
    %72 = vector.load %arg3[%c13, %c0_36] : memref<27x512xf32, #tpu.memory_space<vmem>>, vector<1x512xf32>
    %73 = vector.broadcast %72 : vector<1x512xf32> to vector<8x512xf32>
    %74 = arith.mulf %71, %73 : vector<8x512xf32>
    %c104 = arith.constant 104 : index
    %c0_37 = arith.constant 0 : index
    %75 = vector.load %arg10[%c104, %c0_37] : memref<216x512xf32, #tpu.memory_space<vmem>>, vector<8x512xf32>
    tpu.vector_store %arg10[%c104, %c0_37], %74 {strides = array<i32>} : memref<216x512xf32, #tpu.memory_space<vmem>>, vector<8x512xf32>,
    %76 = vector.extract_strided_slice %5 {offsets = [0, 129], sizes = [8, 512], strides = [1, 1]} : vector<8x768xf32> to vector<8x512xf32>
    %c14 = arith.constant 14 : index
    %c0_38 = arith.constant 0 : index
    %77 = vector.load %arg3[%c14, %c0_38] : memref<27x512xf32, #tpu.memory_space<vmem>>, vector<1x512xf32>
    %78 = vector.broadcast %77 : vector<1x512xf32> to vector<8x512xf32>
    %79 = arith.mulf %76, %78 : vector<8x512xf32>
    %c112 = arith.constant 112 : index
    %c0_39 = arith.constant 0 : index
    %80 = vector.load %arg10[%c112, %c0_39] : memref<216x512xf32, #tpu.memory_space<vmem>>, vector<8x512xf32>
    tpu.vector_store %arg10[%c112, %c0_39], %79 {strides = array<i32>} : memref<216x512xf32, #tpu.memory_space<vmem>>, vector<8x512xf32>,
    %81 = vector.extract_strided_slice %5 {offsets = [0, 135], sizes = [8, 512], strides = [1, 1]} : vector<8x768xf32> to vector<8x512xf32>
    %c15 = arith.constant 15 : index
    %c0_40 = arith.constant 0 : index
    %82 = vector.load %arg3[%c15, %c0_40] : memref<27x512xf32, #tpu.memory_space<vmem>>, vector<1x512xf32>
    %83 = vector.broadcast %82 : vector<1x512xf32> to vector<8x512xf32>
    %84 = arith.mulf %81, %83 : vector<8x512xf32>
    %c120 = arith.constant 120 : index
    %c0_41 = arith.constant 0 : index
    %85 = vector.load %arg10[%c120, %c0_41] : memref<216x512xf32, #tpu.memory_space<vmem>>, vector<8x512xf32>
    tpu.vector_store %arg10[%c120, %c0_41], %84 {strides = array<i32>} : memref<216x512xf32, #tpu.memory_space<vmem>>, vector<8x512xf32>,
    %86 = vector.extract_strided_slice %5 {offsets = [0, 136], sizes = [8, 512], strides = [1, 1]} : vector<8x768xf32> to vector<8x512xf32>
    %c16_42 = arith.constant 16 : index
    %c0_43 = arith.constant 0 : index
    %87 = vector.load %arg3[%c16_42, %c0_43] : memref<27x512xf32, #tpu.memory_space<vmem>>, vector<1x512xf32>
    %88 = vector.broadcast %87 : vector<1x512xf32> to vector<8x512xf32>
    %89 = arith.mulf %86, %88 : vector<8x512xf32>
    %c128_44 = arith.constant 128 : index
    %c0_45 = arith.constant 0 : index
    %90 = vector.load %arg10[%c128_44, %c0_45] : memref<216x512xf32, #tpu.memory_space<vmem>>, vector<8x512xf32>
    tpu.vector_store %arg10[%c128_44, %c0_45], %89 {strides = array<i32>} : memref<216x512xf32, #tpu.memory_space<vmem>>, vector<8x512xf32>,
    %91 = vector.extract_strided_slice %5 {offsets = [0, 137], sizes = [8, 512], strides = [1, 1]} : vector<8x768xf32> to vector<8x512xf32>
    %c17 = arith.constant 17 : index
    %c0_46 = arith.constant 0 : index
    %92 = vector.load %arg3[%c17, %c0_46] : memref<27x512xf32, #tpu.memory_space<vmem>>, vector<1x512xf32>
    %93 = vector.broadcast %92 : vector<1x512xf32> to vector<8x512xf32>
    %94 = arith.mulf %91, %93 : vector<8x512xf32>
    %c136 = arith.constant 136 : index
    %c0_47 = arith.constant 0 : index
    %95 = vector.load %arg10[%c136, %c0_47] : memref<216x512xf32, #tpu.memory_space<vmem>>, vector<8x512xf32>
    tpu.vector_store %arg10[%c136, %c0_47], %94 {strides = array<i32>} : memref<216x512xf32, #tpu.memory_space<vmem>>, vector<8x512xf32>,
    %96 = vector.extract_strided_slice %5 {offsets = [0, 183], sizes = [8, 512], strides = [1, 1]} : vector<8x768xf32> to vector<8x512xf32>
    %c18 = arith.constant 18 : index
    %c0_48 = arith.constant 0 : index
    %97 = vector.load %arg3[%c18, %c0_48] : memref<27x512xf32, #tpu.memory_space<vmem>>, vector<1x512xf32>
    %98 = vector.broadcast %97 : vector<1x512xf32> to vector<8x512xf32>
    %99 = arith.mulf %96, %98 : vector<8x512xf32>
    %c144 = arith.constant 144 : index
    %c0_49 = arith.constant 0 : index
    %100 = vector.load %arg10[%c144, %c0_49] : memref<216x512xf32, #tpu.memory_space<vmem>>, vector<8x512xf32>
    tpu.vector_store %arg10[%c144, %c0_49], %99 {strides = array<i32>} : memref<216x512xf32, #tpu.memory_space<vmem>>, vector<8x512xf32>,
    %101 = vector.extract_strided_slice %5 {offsets = [0, 184], sizes = [8, 512], strides = [1, 1]} : vector<8x768xf32> to vector<8x512xf32>
    %c19 = arith.constant 19 : index
    %c0_50 = arith.constant 0 : index
    %102 = vector.load %arg3[%c19, %c0_50] : memref<27x512xf32, #tpu.memory_space<vmem>>, vector<1x512xf32>
    %103 = vector.broadcast %102 : vector<1x512xf32> to vector<8x512xf32>
    %104 = arith.mulf %101, %103 : vector<8x512xf32>
    %c152 = arith.constant 152 : index
    %c0_51 = arith.constant 0 : index
    %105 = vector.load %arg10[%c152, %c0_51] : memref<216x512xf32, #tpu.memory_space<vmem>>, vector<8x512xf32>
    tpu.vector_store %arg10[%c152, %c0_51], %104 {strides = array<i32>} : memref<216x512xf32, #tpu.memory_space<vmem>>, vector<8x512xf32>,
    %106 = vector.extract_strided_slice %5 {offsets = [0, 185], sizes = [8, 512], strides = [1, 1]} : vector<8x768xf32> to vector<8x512xf32>
    %c20 = arith.constant 20 : index
    %c0_52 = arith.constant 0 : index
    %107 = vector.load %arg3[%c20, %c0_52] : memref<27x512xf32, #tpu.memory_space<vmem>>, vector<1x512xf32>
    %108 = vector.broadcast %107 : vector<1x512xf32> to vector<8x512xf32>
    %109 = arith.mulf %106, %108 : vector<8x512xf32>
    %c160 = arith.constant 160 : index
    %c0_53 = arith.constant 0 : index
    %110 = vector.load %arg10[%c160, %c0_53] : memref<216x512xf32, #tpu.memory_space<vmem>>, vector<8x512xf32>
    tpu.vector_store %arg10[%c160, %c0_53], %109 {strides = array<i32>} : memref<216x512xf32, #tpu.memory_space<vmem>>, vector<8x512xf32>,
    %111 = vector.extract_strided_slice %5 {offsets = [0, 191], sizes = [8, 512], strides = [1, 1]} : vector<8x768xf32> to vector<8x512xf32>
    %c21 = arith.constant 21 : index
    %c0_54 = arith.constant 0 : index
    %112 = vector.load %arg3[%c21, %c0_54] : memref<27x512xf32, #tpu.memory_space<vmem>>, vector<1x512xf32>
    %113 = vector.broadcast %112 : vector<1x512xf32> to vector<8x512xf32>
    %114 = arith.mulf %111, %113 : vector<8x512xf32>
    %c168 = arith.constant 168 : index
    %c0_55 = arith.constant 0 : index
    %115 = vector.load %arg10[%c168, %c0_55] : memref<216x512xf32, #tpu.memory_space<vmem>>, vector<8x512xf32>
    tpu.vector_store %arg10[%c168, %c0_55], %114 {strides = array<i32>} : memref<216x512xf32, #tpu.memory_space<vmem>>, vector<8x512xf32>,
    %116 = vector.extract_strided_slice %5 {offsets = [0, 192], sizes = [8, 512], strides = [1, 1]} : vector<8x768xf32> to vector<8x512xf32>
    %c22 = arith.constant 22 : index
    %c0_56 = arith.constant 0 : index
    %117 = vector.load %arg3[%c22, %c0_56] : memref<27x512xf32, #tpu.memory_space<vmem>>, vector<1x512xf32>
    %118 = vector.broadcast %117 : vector<1x512xf32> to vector<8x512xf32>
    %119 = arith.mulf %116, %118 : vector<8x512xf32>
    %c176 = arith.constant 176 : index
    %c0_57 = arith.constant 0 : index
    %120 = vector.load %arg10[%c176, %c0_57] : memref<216x512xf32, #tpu.memory_space<vmem>>, vector<8x512xf32>
    tpu.vector_store %arg10[%c176, %c0_57], %119 {strides = array<i32>} : memref<216x512xf32, #tpu.memory_space<vmem>>, vector<8x512xf32>,
    %121 = vector.extract_strided_slice %5 {offsets = [0, 193], sizes = [8, 512], strides = [1, 1]} : vector<8x768xf32> to vector<8x512xf32>
    %c23 = arith.constant 23 : index
    %c0_58 = arith.constant 0 : index
    %122 = vector.load %arg3[%c23, %c0_58] : memref<27x512xf32, #tpu.memory_space<vmem>>, vector<1x512xf32>
    %123 = vector.broadcast %122 : vector<1x512xf32> to vector<8x512xf32>
    %124 = arith.mulf %121, %123 : vector<8x512xf32>
    %c184 = arith.constant 184 : index
    %c0_59 = arith.constant 0 : index
    %125 = vector.load %arg10[%c184, %c0_59] : memref<216x512xf32, #tpu.memory_space<vmem>>, vector<8x512xf32>
    tpu.vector_store %arg10[%c184, %c0_59], %124 {strides = array<i32>} : memref<216x512xf32, #tpu.memory_space<vmem>>, vector<8x512xf32>,
    %126 = vector.extract_strided_slice %5 {offsets = [0, 199], sizes = [8, 512], strides = [1, 1]} : vector<8x768xf32> to vector<8x512xf32>
    %c24_60 = arith.constant 24 : index
    %c0_61 = arith.constant 0 : index
    %127 = vector.load %arg3[%c24_60, %c0_61] : memref<27x512xf32, #tpu.memory_space<vmem>>, vector<1x512xf32>
    %128 = vector.broadcast %127 : vector<1x512xf32> to vector<8x512xf32>
    %129 = arith.mulf %126, %128 : vector<8x512xf32>
    %c192 = arith.constant 192 : index
    %c0_62 = arith.constant 0 : index
    %130 = vector.load %arg10[%c192, %c0_62] : memref<216x512xf32, #tpu.memory_space<vmem>>, vector<8x512xf32>
    tpu.vector_store %arg10[%c192, %c0_62], %129 {strides = array<i32>} : memref<216x512xf32, #tpu.memory_space<vmem>>, vector<8x512xf32>,
    %131 = vector.extract_strided_slice %5 {offsets = [0, 200], sizes = [8, 512], strides = [1, 1]} : vector<8x768xf32> to vector<8x512xf32>
    %c25 = arith.constant 25 : index
    %c0_63 = arith.constant 0 : index
    %132 = vector.load %arg3[%c25, %c0_63] : memref<27x512xf32, #tpu.memory_space<vmem>>, vector<1x512xf32>
    %133 = vector.broadcast %132 : vector<1x512xf32> to vector<8x512xf32>
    %134 = arith.mulf %131, %133 : vector<8x512xf32>
    %c200 = arith.constant 200 : index
    %c0_64 = arith.constant 0 : index
    %135 = vector.load %arg10[%c200, %c0_64] : memref<216x512xf32, #tpu.memory_space<vmem>>, vector<8x512xf32>
    tpu.vector_store %arg10[%c200, %c0_64], %134 {strides = array<i32>} : memref<216x512xf32, #tpu.memory_space<vmem>>, vector<8x512xf32>,
    %136 = vector.extract_strided_slice %5 {offsets = [0, 201], sizes = [8, 512], strides = [1, 1]} : vector<8x768xf32> to vector<8x512xf32>
    %c26 = arith.constant 26 : index
    %c0_65 = arith.constant 0 : index
    %137 = vector.load %arg3[%c26, %c0_65] : memref<27x512xf32, #tpu.memory_space<vmem>>, vector<1x512xf32>
    %138 = vector.broadcast %137 : vector<1x512xf32> to vector<8x512xf32>
    %139 = arith.mulf %136, %138 : vector<8x512xf32>
    %c208 = arith.constant 208 : index
    %c0_66 = arith.constant 0 : index
    %140 = vector.load %arg10[%c208, %c0_66] : memref<216x512xf32, #tpu.memory_space<vmem>>, vector<8x512xf32>
    tpu.vector_store %arg10[%c208, %c0_66], %139 {strides = array<i32>} : memref<216x512xf32, #tpu.memory_space<vmem>>, vector<8x512xf32>,
    %c0_67 = arith.constant 0 : index
    %c0_68 = arith.constant 0 : index
    %141 = vector.load %arg2[%c0_67, %c0_68] : memref<16x216xf32, #tpu.memory_space<vmem>>, vector<16x216xf32>
    %c0_69 = arith.constant 0 : index
    %c0_70 = arith.constant 0 : index
    %142 = vector.load %arg10[%c0_69, %c0_70] : memref<216x512xf32, #tpu.memory_space<vmem>>, vector<216x512xf32>
    %cst_71 = arith.constant dense<0.000000e+00> : vector<16x512xf32>
    %143 = tpu.matmul %141, %142, %cst_71 {dimension_numbers = #tpu.dot_dimension_numbers<[1], [0], [0], [1], [0, 0, 1, 1], [], []>} : vector<16x216xf32>, vector<216x512xf32>, vector<16x512xf32> -> vector<16x512xf32>
    %c0_72 = arith.constant 0 : index
    %c0_73 = arith.constant 0 : index
    %144 = vector.load %arg5[%c0_72, %c0_73] : memref<16x1xf32, #tpu.memory_space<vmem>>, vector<16x1xf32>
    %145 = vector.broadcast %144 : vector<16x1xf32> to vector<16x512xf32>
    %146 = arith.addf %143, %145 : vector<16x512xf32>
    %cst_74 = arith.constant dense<0.000000e+00> : vector<16xf32>
    %147 = vector.multi_reduction <add>, %146, %cst_74 [1] : vector<16x512xf32> to vector<16xf32>
    %148 = vector.shape_cast %147 : vector<16xf32> to vector<16x1xf32>
    %c0_75 = arith.constant 0 : index
    %c0_76 = arith.constant 0 : index
    %149 = vector.load %arg4[%c0_75, %c0_76] : memref<16x16xf32, #tpu.memory_space<vmem>>, vector<16x16xf32>
    %cst_77 = arith.constant dense<0.000000e+00> : vector<16x1xf32>
    %150 = tpu.matmul %149, %148, %cst_77 {dimension_numbers = #tpu.dot_dimension_numbers<[1], [0], [0], [1], [0, 0, 1, 1], [], []>} : vector<16x16xf32>, vector<16x1xf32>, vector<16x1xf32> -> vector<16x1xf32>
    %151 = vector.broadcast %150 : vector<16x1xf32> to vector<16x512xf32>
    %152 = arith.subf %146, %151 : vector<16x512xf32>
    %153 = arith.mulf %152, %152 : vector<16x512xf32>
    %cst_78 = arith.constant dense<0.000000e+00> : vector<16xf32>
    %154 = vector.multi_reduction <add>, %153, %cst_78 [1] : vector<16x512xf32> to vector<16xf32>
    %155 = vector.shape_cast %154 : vector<16xf32> to vector<16x1xf32>
    %c0_79 = arith.constant 0 : index
    %c0_80 = arith.constant 0 : index
    %156 = vector.load %arg4[%c0_79, %c0_80] : memref<16x16xf32, #tpu.memory_space<vmem>>, vector<16x16xf32>
    %cst_81 = arith.constant dense<0.000000e+00> : vector<16x1xf32>
    %157 = tpu.matmul %156, %155, %cst_81 {dimension_numbers = #tpu.dot_dimension_numbers<[1], [0], [0], [1], [0, 0, 1, 1], [], []>} : vector<16x16xf32>, vector<16x1xf32>, vector<16x1xf32> -> vector<16x1xf32>
    %cst_82 = arith.constant 9.99999974E-6 : f32
    %158 = vector.broadcast %cst_82 : f32 to vector<16x1xf32>
    %159 = arith.addf %157, %158 : vector<16x1xf32>
    %160 = math.rsqrt %159 : vector<16x1xf32>
    %161 = vector.broadcast %160 : vector<16x1xf32> to vector<16x512xf32>
    %162 = arith.mulf %152, %161 : vector<16x512xf32>
    %c0_83 = arith.constant 0 : index
    %c0_84 = arith.constant 0 : index
    %163 = vector.load %arg6[%c0_83, %c0_84] : memref<16x1xf32, #tpu.memory_space<vmem>>, vector<16x1xf32>
    %164 = vector.broadcast %163 : vector<16x1xf32> to vector<16x512xf32>
    %165 = arith.mulf %162, %164 : vector<16x512xf32>
    %c0_85 = arith.constant 0 : index
    %c0_86 = arith.constant 0 : index
    %166 = vector.load %arg7[%c0_85, %c0_86] : memref<16x1xf32, #tpu.memory_space<vmem>>, vector<16x1xf32>
    %167 = vector.broadcast %166 : vector<16x1xf32> to vector<16x512xf32>
    %168 = arith.addf %165, %167 : vector<16x512xf32>
    %169 = arith.negf %168 : vector<16x512xf32>
    %170 = math.exp %169 : vector<16x512xf32>
    %cst_87 = arith.constant 1.000000e+00 : f32
    %171 = vector.broadcast %cst_87 : f32 to vector<16x512xf32>
    %172 = arith.addf %171, %170 : vector<16x512xf32>
    %173 = arith.divf %171, %172 : vector<16x512xf32>
    %174 = arith.mulf %168, %173 : vector<16x512xf32>
    %c0_88 = arith.constant 0 : index
    %c0_89 = arith.constant 0 : index
    %c0_90 = arith.constant 0 : index
    %175 = vector.load %arg8[%c0_88, %c0_89, %c0_90] : memref<1x16x512xf32, #tpu.memory_space<vmem>>, vector<1x16x512xf32>
    %176 = vector.shape_cast %175 : vector<1x16x512xf32> to vector<16x512xf32>
    %177 = vector.shape_cast %174 : vector<16x512xf32> to vector<1x16x512xf32>
    tpu.vector_store %arg8[%c0_88, %c0_89, %c0_90], %177 {strides = array<i32>} : memref<1x16x512xf32, #tpu.memory_space<vmem>>, vector<1x16x512xf32>,
    return
  }
  func.func @transform_0(%arg0: i32) -> (i32, i32, i32) {
    %c0_i32 = arith.constant 0 : i32
    %c0_i32_0 = arith.constant 0 : i32
    %c0_i32_1 = arith.constant 0 : i32
    return %arg0, %c0_i32, %c0_i32_0 : i32, i32, i32
  }
  func.func @transform_1(%arg0: i32) -> (i32, i32) {
    %c0_i32 = arith.constant 0 : i32
    %c0_i32_0 = arith.constant 0 : i32
    %c0_i32_1 = arith.constant 0 : i32
    return %c0_i32, %c0_i32_0 : i32, i32
  }
  func.func @transform_2(%arg0: i32) -> (i32, i32) {
    %c0_i32 = arith.constant 0 : i32
    %c0_i32_0 = arith.constant 0 : i32
    %c0_i32_1 = arith.constant 0 : i32
    return %c0_i32, %c0_i32_0 : i32, i32
  }
  func.func @transform_3(%arg0: i32) -> (i32, i32) {
    %c0_i32 = arith.constant 0 : i32
    %c0_i32_0 = arith.constant 0 : i32
    %c0_i32_1 = arith.constant 0 : i32
    return %c0_i32, %c0_i32_0 : i32, i32
  }
  func.func @transform_4(%arg0: i32) -> (i32, i32) {
    %c0_i32 = arith.constant 0 : i32
    %c0_i32_0 = arith.constant 0 : i32
    %c0_i32_1 = arith.constant 0 : i32
    return %c0_i32, %c0_i32_0 : i32, i32
  }
  func.func @transform_5(%arg0: i32) -> (i32, i32) {
    %c0_i32 = arith.constant 0 : i32
    %c0_i32_0 = arith.constant 0 : i32
    %c0_i32_1 = arith.constant 0 : i32
    return %c0_i32, %c0_i32_0 : i32, i32
  }
  func.func @transform_6(%arg0: i32) -> (i32, i32) {
    %c0_i32 = arith.constant 0 : i32
    %c0_i32_0 = arith.constant 0 : i32
    %c0_i32_1 = arith.constant 0 : i32
    return %c0_i32, %c0_i32_0 : i32, i32
  }
  func.func @transform_7(%arg0: i32) -> (i32, i32, i32) {
    %c0_i32 = arith.constant 0 : i32
    %c0_i32_0 = arith.constant 0 : i32
    %c0_i32_1 = arith.constant 0 : i32
    return %arg0, %c0_i32, %c0_i32_0 : i32, i32, i32
  }
}

</mosaic_0001>

<bundles_post_ra>
// kernel: tpu_custom_call.1
= control target key start
LH: loop header
LB: loop body
LE: loop exit
PB: predicated region body
PF: predicated region fallthrough
CT: control target
= control target key end

     0   :  { %12 = vsyncpa [#allocation5], 0  ;;  %s4915_s0 = inlined_call_operand.hbm [shape: f32[2,8,512], index: 0, kind: input, shape index: {}]   ;;  %s4916_s1 = inlined_call_operand.vmem [shape: f32[16,216], index: 1, kind: input, shape index: {}]   ;;  %s4917_s2 = inlined_call_operand.hbm [shape: f32[27,512], index: 2, kind: input, shape index: {}]   ;;  %s4918_s3 = inlined_call_operand.vmem [shape: f32[16,16], index: 3, kind: input, shape index: {}]   ;;  %s4919_s4 = inlined_call_operand.vmem [shape: f32[16,1], index: 4, kind: input, shape index: {}]   ;;  %s4920_s5 = inlined_call_operand.vmem [shape: f32[16,1], index: 5, kind: input, shape index: {}]   ;;  %s4921_s6 = inlined_call_operand.vmem [shape: f32[16,1], index: 6, kind: input, shape index: {}]   ;;  %s4922_s7 = inlined_call_operand.hbm [shape: f32[2,16,512], index: 7, kind: output, shape index: {}]  }
   0x1   :  { %14 = vsyncpa [#allocation5 + $0x1], 0 }
   0x2   :  { %15 = vsyncpa [#allocation8], 0 }
   0x3   :  { %16 = vsyncpa [#allocation6], 0 }
   0x4   :  { %18 = vsyncpa [#allocation6 + $0x1], 0  ;;  %s3589_s24 = smov 0   ;;  %s3591_s25 = smov 0  }
   0x5   :  { %s3593_s26 = smov 0   ;;  %s3595_s27 = smov 0  }
   0x6 LB: > { %s3610_s28 = sadd.s32 4294967295, %s3522_s27   ;;  %s2830_s29 = sadd.s32 4294967294, %s3522_s27   ;;  %s3522_s27 = sphi %s3595_s27, %s5053_s27   ;;  %s3518_s26 = sphi %s3593_s26, %s5052_s26   ;;  %s3514_s25 = sphi %s3591_s25, %s5051_s25   ;;  %s3510_s24 = sphi %s3589_s24, %s5050_s24  }
   0x7   : > { %p44_p0 = scmp.ne.s32.totalorder %s3514_s25, %s3510_s24  ;;  %p4923_p1 = scmp.eq.s32.totalorder %s3610_s28, 0 }
   0x8   : > { %p200_p3 = scmp.eq.s32.totalorder %s2830_s29, 1  ;;  %p2831_p5 = scmp.ge.s32.totalorder %s3522_s27, 1 }
   0x9   : > { %p3619_p4 = por %p4923_p1, %p44_p0  ;;  %p207_p7 = scmp.lt.s32.totalorder %s3522_s27, 3 }
   0xa   : > { %p3624_p6 = por %p200_p3, %p44_p0  ;;  %s3524_s10 = smov [#allocation7]  }
   0xb   : > { %s4966_s30 = scalar_select %p3619_p4, 1, 0 }
   0xc   : > { %s4967_s8 = scalar_select %p3624_p6, 1, 0 }
   0xd   : > { %p3629_p8 = pnand %p2831_p5, %p207_p7  ;;  %s222_s11 = sshll.u32 %s3524_s10, 4  ;;  %s3633_s11 = int_to_ptr.vmem [resolvable:$true] %s222_s11 }
   0xe   : > { %s3645_s13 = sadd.s32 1, %s3522_s27   ;;  %s31_s14 = sadd.s32 1, %s3518_s26 }
   0xf   : > { %s4968_s9 = scalar_select %p3629_p8, 1, 0 }
  0x10   : > { %p3006_p9 = pneg %p3629_p8  ;;  %s28_s15 = ssub.s32 %s3522_s27, %s3645_s13 }
  0x11   : > { %s3394_s18 = scalar_lea.hbm %s4917_s2, 2048 }
  0x12   : > { %p3640_p11 = pnand %p3006_p9, %p4923_p1  ;;  %p3395_p12 = scmp.ne.s32.totalorder %s4917_s2, %s3394_s18 }
  0x13   : > { %p3401_p5 = scmp.lt.u32.totalorder %s3394_s18, %s4917_s2 }
  0x14   : > { %p3396_p13 = pneg %p3640_p11 }
  0x16   : > { %p3397_p0 = pnand %p3396_p13, %p3395_p12 }
  0x18   : > { %p3398_p3 = pneg %p3397_p0 }
  0x1a   : > { %p3403_p7 = pnand %p3401_p5, %p3398_p3 }
  0x1c   : > { %3406 = shalt.err (!%p3403_p7)
}
  0x1d   : > { %s3407_s23 = scalar_lea.vmem %s3633_s11, 2048  ;;  %p3415_p2 = scmp.lt.s32.totalorder %s3633_s11, %s3633_s11 }
  0x1e   : > { %p3408_p9 = scmp.ne.s32.totalorder %s3633_s11, %s3407_s23  ;;  %p3416_p6 = scmp.lt.s32.totalorder %s3407_s23, %s3407_s23 }
  0x20   : > { %p3410_p10 = pnand %p3408_p9, %p3396_p13  ;;  %p3417_p4 = por %p3416_p6, %p3415_p2 }
  0x22   : > { %p3411_p1 = pneg %p3410_p10 }
  0x24   : > { %p3418_p8 = pnand %p3417_p4, %p3411_p1 }
  0x26   : > { %3421 = shalt.err (!%p3418_p8)
}
  0x27   : > { %s3525_s29 = smov 512   ;;  %s3526_s10 = smov 32  }
  0x28   : > { %3009 = dma.hbm_to_vmem [thread:$0]  (!%p3640_p11), %s4917_s2, 2048, %s3633_s11, [#allocation8], %s3525_s29, %s3525_s29, %s3526_s10  }
  0x29   : > { %p29_p2 = scmp.eq.s32.totalorder %s28_s15, 0  ;;  %p38_p1 = scmp.ne.s32.totalorder %s3518_s26, %s3514_s25 }
  0x2a   : > { %p39_p4 = scmp.eq.s32.totalorder %s3522_s27, 0  ;;  %p3019_p6 = scmp.lt.s32.totalorder %s3522_s27, 2 }
  0x2b   : > { %s3676_s18 = scalar_select %p29_p2, %s3518_s26, %s31_s14  }
  0x2c   : > { %p40_p8 = por %p39_p4, %p38_p1  ;;  %p4970_p10 = scmp.eq.s32.totalorder %s3610_s28, 1 }
  0x2d   : > { %s248_s20 = sand.u32 1, %s3518_s26   ;;  %s2862_s21 = sshll.u32 %s3522_s27, 9 }
  0x2e   : > { %p3680_p12 = por %p4970_p10, %p38_p1  ;;  %s2834_s22 = sshll.u32 %s248_s20, 5 }
  0x2f   : > { %s3689_s16 = scalar_lea.hbm %s4915_s0, %s2862_s21  ;;  %s252_s11 = scalar_lea.vmem [#allocation4], %s2834_s22 }
  0x30   : > { %s260_s14 = sshll.u32 %s252_s11, 4  ;;  %p3691_p11 = pnand %p3019_p6, %p40_p8  ;;  %s3695_s14 = int_to_ptr.vmem [resolvable:$true] %s260_s14 }
  0x31   : > { %s249_s29 = scalar_lea.sflag [#allocation5], %s248_s20  ;;  %s3422_s10 = scalar_lea.hbm %s3689_s16, 512 }
  0x32   : > { %p3423_p13 = scmp.ne.s32.totalorder %s3689_s16, %s3422_s10  ;;  %p3424_p0 = pneg %p3691_p11 }
  0x33   : > { %s3427_s22 = scalar_lea.hbm %s4915_s0, 1024  ;;  %p3428_p7 = scmp.lt.u32.totalorder %s3689_s16, %s4915_s0 }
  0x34   : > { %p3425_p3 = pnand %p3424_p0, %p3423_p13  ;;  %p3429_p9 = scmp.lt.u32.totalorder %s3427_s22, %s3422_s10 }
  0x35   : > { %p3431_p1 = scmp.lt.u32.totalorder %s3422_s10, %s3689_s16 }
  0x36   : > { %p3426_p5 = pneg %p3425_p3  ;;  %p3430_p2 = por %p3429_p9, %p3428_p7 }
  0x38   : > { %p3432_p4 = por %p3431_p1, %p3430_p2 }
  0x3a   : > { %p3433_p6 = pnand %p3432_p4, %p3426_p5 }
  0x3c   : > { %3436 = shalt.err (!%p3433_p6)
}
  0x3d   : > { %s3437_s20 = scalar_lea.vmem %s3695_s14, 512  ;;  %s3527_s11 = smov [#allocation4]  }
  0x3e   : > { %p3438_p8 = scmp.ne.s32.totalorder %s3695_s14, %s3437_s20  ;;  %s3442_s17 = sshll.u32 %s3527_s11, 4  ;;  %s3443_s17 = int_to_ptr.vmem [resolvable:$false] %s3442_s17 }
  0x3f   : > { %s3444_s21 = scalar_lea.vmem %s3443_s17, 1024  ;;  %p3445_p3 = scmp.lt.s32.totalorder %s3695_s14, %s3443_s17 }
  0x40   : > { %p3440_p10 = pnand %p3438_p8, %p3424_p0  ;;  %p3446_p7 = scmp.lt.s32.totalorder %s3444_s21, %s3437_s20 }
  0x42   : > { %p3441_p13 = pneg %p3440_p10  ;;  %p3447_p9 = por %p3446_p7, %p3445_p3 }
  0x44   : > { %p3448_p2 = pnand %p3447_p9, %p3441_p13 }
  0x46   : > { %3451 = shalt.err (!%p3448_p2)
}
  0x47   : > { %3013 = dma.hbm_to_vmem [thread:$0]  (!%p3691_p11), %s3689_s16, 512, %s3695_s14, %s249_s29  }
  0x48   : > { %p4973_p5 = scmp.ne.s32.totalorder %s4968_s9, 0 }
  0x4a   : > { %269 = sbr.rel (%p4973_p5) target bundleno = 1897 (0x769), region = 48 }
  0x51   : > { %s3725_s10 = sand.u32 1, %s3514_s25   ;;  %p4974_p0 = scmp.ne.s32.totalorder %s4966_s30, 0 }
  0x52   : > { %s2838_s22 = sshll.u32 %s3725_s10, 5  ;;  %s272_s12 = scalar_lea.sflag [#allocation5], %s3725_s10 }
  0x53   : > { %s3729_s23 = scalar_lea.vmem [#allocation4], %s2838_s22 }
  0x54   : > { %3497 = dma.done.wait (%p4974_p0), %s272_s12, 512  }
  0x55   : > { %3499 = vsyncadd (%p4974_p0), %s272_s12, 4294966784  ;;  %p4975_p11 = scmp.eq.s32.totalorder %s3610_s28, 0 }
  0x57   : > { %3501 = dma.done.wait (%p4975_p11), [#allocation8], 2048   ;;  %p4976_p1 = pmov %p4975_p11 }
  0x58   : > { %v332_v0 = vlaneseq  ;;  %v330_v5 = vld [vmem:[#allocation7] ss:$8 sm:$0xf]  ;;  %v399_v6 = vld [vmem:[#allocation7 + $0x1] ss:$8 sm:$0xf] }
  0x59   : > { %3503 = vsyncadd (%p4976_p1), [#allocation8], 4294965248  ;;  %s4963_s30 = smov 55   ;;  %s3529_s9 = smov 56   ;;  %vm356_vm0 = vcmask 449536   ;;  %vm425_vm1 = vcmask 457728  }
  0x5a   : > { %v333_v1 = vshrl.u32 %v332_v0, 7  ;;  %v468_v16 = vld [vmem:[#allocation7 + $0x2] ss:$8 sm:$0xf]  ;;  %s3530_s16 = smov 57   ;;  %s3531_s14 = smov 63  }
  0x5b   : > { %v537_v19 = vld [vmem:[#allocation7 + $0x3] ss:$8 sm:$0xf]  ;;  %v606_v26 = vld [vmem:[#allocation7 + $0x4] ss:$8 sm:$0xf] }
  0x5c   : > { %v3739_v2 = vsub.s32 2, %v333_v1  ;;  %v3741_v3 = vsub.s32 0, %v333_v1  ;;  %v3743_v4 = vsub.s32 1, %v333_v1  ;;  %v3755_v13 = vsub.s32 3, %v333_v1  ;;  %s3532_s15 = smov 64   ;;  %s3533_s29 = smov 65  }
  0x5d   : > { %v674_v29 = vld [vmem:[#allocation7 + $0x5] ss:$8 sm:$0xf]  ;;  %v741_v36 = vld [vmem:[#allocation7 + $0x6] ss:$8 sm:$0xf] }
  0x5e   : > { %4977 = vst [vmem:[#allocation13_spill] sm:$0xff] %v3739_v2  ;;  %4978 = vst [vmem:[#allocation14_spill] sm:$0xff] %v3741_v3  ;;  %v343_v7 = vrot.slane %v330_v5, %v3739_v2  ;;  %v335_v8 = vrot.slane %v330_v5, %v3741_v3  ;;  %v404_v9 = vrot.slane %v399_v6, %v3741_v3  ;;  %v808_v39 = vld [vmem:[#allocation7 + $0x7] ss:$8 sm:$0xf]  ;;  %s3534_s20 = smov 71  }
  0x5f   : > { %4979 = vst [vmem:[#allocation15_spill] sm:$0xff] %v3743_v4  ;;  %v339_v10 = vrot.slane %v330_v5, %v3743_v4  ;;  %v412_v11 = vrot.slane %v399_v6, %v3739_v2  ;;  %v408_v12 = vrot.slane %v399_v6, %v3743_v4  ;;  %4980 = vst [vmem:[#allocation16_spill] sm:$0xff] %v3755_v13  ;;  %s3535_s11 = smov 72   ;;  %v875_v46 = vld [vmem:[#allocation7 + $0x20] ss:$8 sm:$0xf] }
  0x60   : > { %352 = vrot.lane.b32.xlu1 %v343_v7, %s4963_s30  ;;  %348 = vrot.lane.b32.xlu0 %v335_v8, %s4963_s30  ;;  %v416_v14 = vrot.slane %v399_v6, %v3755_v13  ;;  %v347_v15 = vrot.slane %v330_v5, %v3755_v13  ;;  %v477_v17 = vrot.slane %v468_v16, %v3743_v4  ;;  %v942_v49 = vld [vmem:[#allocation7 + $0x21] ss:$8 sm:$0xf]  ;;  %s3536_s17 = smov 73   ;;  %s4926_s21 = smov 119   ;;  %vm494_vm2 = vcmask 465920  }
  0x61   : > { %v473_v18 = vrot.slane %v468_v16, %v3741_v3  ;;  %v542_v20 = vrot.slane %v537_v19, %v3741_v3  ;;  %v481_v21 = vrot.slane %v468_v16, %v3739_v2  ;;  %v550_v22 = vrot.slane %v537_v19, %v3739_v2  ;;  %v1011_v56 = vld [vmem:[#allocation7 + $0x22] ss:$8 sm:$0xf]  ;;  %v1080_v59 = vld [vmem:[#allocation7 + $0x23] ss:$8 sm:$0xf] }
  0x62   : > { %v546_v23 = vrot.slane %v537_v19, %v3743_v4  ;;  %v554_v24 = vrot.slane %v537_v19, %v3755_v13  ;;  %v485_v25 = vrot.slane %v468_v16, %v3755_v13  ;;  %v615_v27 = vrot.slane %v606_v26, %v3743_v4  ;;  %s4928_s22 = smov 120   ;;  %s4930_s12 = smov 121   ;;  %v1149_v5 = vld [vmem:[#allocation7 + $0x24] ss:$8 sm:$0xf] }
  0x63   : > { %v611_v28 = vrot.slane %v606_v26, %v3741_v3  ;;  %v679_v30 = vrot.slane %v674_v29, %v3741_v3  ;;  %v619_v31 = vrot.slane %v606_v26, %v3739_v2  ;;  %v687_v32 = vrot.slane %v674_v29, %v3739_v2 }
  0x64   : > { %417 = vrot.lane.b32.xlu1 %v404_v9, %s3529_s9  ;;  %350 = vrot.lane.b32.xlu0 %v339_v10, %s4963_s30  ;;  %v683_v33 = vrot.slane %v674_v29, %v3743_v4  ;;  %v691_v34 = vrot.slane %v674_v29, %v3755_v13  ;;  %v623_v35 = vrot.slane %v606_v26, %v3755_v13  ;;  %v1249_v10 = vld [vmem:[#allocation7 + $0x26] ss:$8 sm:$0xf]  ;;  %v1450_v26 = vld [vmem:[#allocation7 + $0x41] ss:$8 sm:$0xf] }
  0x65   : > { %v750_v37 = vrot.slane %v741_v36, %v3743_v4  ;;  %v746_v38 = vrot.slane %v741_v36, %v3741_v3  ;;  %v813_v40 = vrot.slane %v808_v39, %v3741_v3  ;;  %v754_v41 = vrot.slane %v741_v36, %v3739_v2 }
  0x66   : > { %v821_v42 = vrot.slane %v808_v39, %v3739_v2  ;;  %v817_v43 = vrot.slane %v808_v39, %v3743_v4  ;;  %v825_v44 = vrot.slane %v808_v39, %v3755_v13  ;;  %v758_v45 = vrot.slane %v741_v36, %v3755_v13  ;;  %v1517_v39 = vld [vmem:[#allocation7 + $0x42] ss:$8 sm:$0xf] }
  0x67   : > { %v884_v47 = vrot.slane %v875_v46, %v3743_v4  ;;  %v880_v48 = vrot.slane %v875_v46, %v3741_v3  ;;  %v947_v50 = vrot.slane %v942_v49, %v3741_v3  ;;  %v888_v51 = vrot.slane %v875_v46, %v3739_v2 }
  0x68   : > { %421 = vrot.lane.b32.xlu1 %v412_v11, %s3529_s9  ;;  %419 = vrot.lane.b32.xlu0 %v408_v12, %s3529_s9  ;;  %v955_v52 = vrot.slane %v942_v49, %v3739_v2  ;;  %v951_v53 = vrot.slane %v942_v49, %v3743_v4  ;;  %v959_v54 = vrot.slane %v942_v49, %v3755_v13  ;;  %vm563_vm3 = vcmask 515072  }
  0x69   : > { %v892_v55 = vrot.slane %v875_v46, %v3755_v13  ;;  %v1020_v57 = vrot.slane %v1011_v56, %v3743_v4  ;;  %v1016_v58 = vrot.slane %v1011_v56, %v3741_v3  ;;  %v1085_v60 = vrot.slane %v1080_v59, %v3741_v3 }
  0x6a   : > { %v1024_v61 = vrot.slane %v1011_v56, %v3739_v2  ;;  %v1093_v62 = vrot.slane %v1080_v59, %v3739_v2  ;;  %v1089_v63 = vrot.slane %v1080_v59, %v3743_v4  ;;  %v1097_v0 = vrot.slane %v1080_v59, %v3755_v13 }
  0x6b   : > { %v1028_v1 = vrot.slane %v1011_v56, %v3755_v13  ;;  %v1158_v6 = vrot.slane %v1149_v5, %v3743_v4  ;;  %v1154_v7 = vrot.slane %v1149_v5, %v3741_v3  ;;  %v1166_v8 = vrot.slane %v1149_v5, %v3755_v13 }
  0x6c   : > { %423 = vrot.lane.b32.xlu1 %v416_v14, %s3529_s9  ;;  %354 = vrot.lane.b32.xlu0 %v347_v15, %s4963_s30  ;;  %v1162_v9 = vrot.slane %v1149_v5, %v3739_v2  ;;  %v1258_v11 = vrot.slane %v1249_v10, %v3743_v4  ;;  %v1254_v12 = vrot.slane %v1249_v10, %v3741_v3  ;;  %v1316_v14 = vld [vmem:[#allocation7 + $0x27] ss:$8 sm:$0xf]  ;;  %vm632_vm4 = vcmask 523264  }
  0x6d   : > { %v1321_v15 = vrot.slane %v1316_v14, %v3741_v3  ;;  %v1262_v16 = vrot.slane %v1249_v10, %v3739_v2  ;;  %v1333_v19 = vrot.slane %v1316_v14, %v3755_v13  ;;  %v1455_v29 = vrot.slane %v1450_v26, %v3741_v3 }
  0x6e   : > { %v1534_v56 = vrot.slane %v1517_v39, %v3755_v13  ;;  %vm592_vm5 = vcmask 531456   ;;  %vm523_vm6 = vcmask 580608   ;;  %vm4965_vm7 = vcmask 588800  }
  0x6f   : > { %vm385_vm8 = vcmask 596992   ;;  %vm4962_vm9 = vcmask 973824   ;;  %vm1037_vm10 = vcmask 982016   ;;  %vm1106_vm11 = vcmask 990208  }
  0x70   : > { %488 = vrot.lane.b32.xlu1 %v477_v17, %s3530_s16  ;;  %486 = vrot.lane.b32.xlu0 %v473_v18, %s3530_s16  ;;  %v1329_v17 = vrot.slane %v1316_v14, %v3739_v2  ;;  %v1325_v18 = vrot.slane %v1316_v14, %v3743_v4  ;;  %vm1175_vm12 = vcmask 1039360   ;;  %vm1204_vm13 = vcmask 7168  }
  0x71   : > { %vm1135_vm14 = vcmask 56320   ;;  %vm997_vm15 = vcmask 72704  }
  0x74   : > { %555 = vrot.lane.b32.xlu1 %v542_v20, %s3531_s14  ;;  %490 = vrot.lane.b32.xlu0 %v481_v21, %s3530_s16  ;;  %v1266_v20 = vrot.slane %v1249_v10, %v3755_v13  ;;  %v1383_v21 = vld [vmem:[#allocation7 + $0x40] ss:$8 sm:$0xf] }
  0x78   : > { %559 = vrot.lane.b32.xlu1 %v550_v22, %s3531_s14  ;;  %557 = vrot.lane.b32.xlu0 %v546_v23, %s3531_s14 }
  0x7c   : > { %561 = vrot.lane.b32.xlu1 %v554_v24, %s3531_s14  ;;  %492 = vrot.lane.b32.xlu0 %v485_v25, %s3530_s16  ;;  %v1392_v24 = vrot.slane %v1383_v21, %v3743_v4  ;;  %v1388_v25 = vrot.slane %v1383_v21, %v3741_v3 }
  0x80   : > { %626 = vrot.lane.b32.xlu1 %v615_v27, %s3532_s15  ;;  %624 = vrot.lane.b32.xlu0 %v611_v28, %s3532_s15 }
  0x84   : > { %692 = vrot.lane.b32.xlu1 %v679_v30, %s3533_s29  ;;  %628 = vrot.lane.b32.xlu0 %v619_v31, %s3532_s15  ;;  %v1396_v30 = vrot.slane %v1383_v21, %v3739_v2 }
  0x88   : > { %696 = vrot.lane.b32.xlu1 %v687_v32, %s3533_s29  ;;  %694 = vrot.lane.b32.xlu0 %v683_v33, %s3533_s29  ;;  %v1463_v33 = vrot.slane %v1450_v26, %v3739_v2 }
  0x8c   : > { %698 = vrot.lane.b32.xlu1 %v691_v34, %s3533_s29  ;;  %630 = vrot.lane.b32.xlu0 %v623_v35, %s3532_s15  ;;  %v1459_v34 = vrot.slane %v1450_v26, %v3743_v4 }
  0x90   : > { %761 = vrot.lane.b32.xlu1 %v750_v37, %s3534_s20  ;;  %759 = vrot.lane.b32.xlu0 %v746_v38, %s3534_s20  ;;  %v1467_v37 = vrot.slane %v1450_v26, %v3755_v13  ;;  %v1400_v38 = vrot.slane %v1383_v21, %v3755_v13 }
  0x94   : > { %826 = vrot.lane.b32.xlu1 %v813_v40, %s3535_s11  ;;  %763 = vrot.lane.b32.xlu0 %v754_v41, %s3534_s20 }
  0x98   : > { %830 = vrot.lane.b32.xlu1 %v821_v42, %s3535_s11  ;;  %828 = vrot.lane.b32.xlu0 %v817_v43, %s3535_s11  ;;  %v1526_v42 = vrot.slane %v1517_v39, %v3743_v4  ;;  %v1522_v43 = vrot.slane %v1517_v39, %v3741_v3 }
  0x9c   : > { %832 = vrot.lane.b32.xlu1 %v825_v44, %s3535_s11  ;;  %765 = vrot.lane.b32.xlu0 %v758_v45, %s3534_s20  ;;  %v1584_v44 = vld [vmem:[#allocation7 + $0x43] ss:$8 sm:$0xf] }
  0xa0   : > { %895 = vrot.lane.b32.xlu1 %v884_v47, %s3536_s17  ;;  %893 = vrot.lane.b32.xlu0 %v880_v48, %s3536_s17  ;;  %v1589_v47 = vrot.slane %v1584_v44, %v3741_v3  ;;  %v1530_v48 = vrot.slane %v1517_v39, %v3739_v2 }
  0xa4   : > { %960 = vrot.lane.b32.xlu1 %v947_v50, %s4926_s21  ;;  %897 = vrot.lane.b32.xlu0 %v888_v51, %s3536_s17  ;;  %v1597_v51 = vrot.slane %v1584_v44, %v3739_v2 }
  0xa8   : > { %964 = vrot.lane.b32.xlu1 %v955_v52, %s4926_s21  ;;  %962 = vrot.lane.b32.xlu0 %v951_v53, %s4926_s21  ;;  %v1593_v52 = vrot.slane %v1584_v44, %v3743_v4 }
  0xac   : > { %966 = vrot.lane.b32.xlu1 %v959_v54, %s4926_s21  ;;  %899 = vrot.lane.b32.xlu0 %v892_v55, %s3536_s17  ;;  %s4932_s21 = smov 127   ;;  %v1601_v55 = vrot.slane %v1584_v44, %v3755_v13 }
  0xb0   : > { %1031 = vrot.lane.b32.xlu1 %v1020_v57, %s4928_s22  ;;  %1029 = vrot.lane.b32.xlu0 %v1016_v58, %s4928_s22  ;;  %v1651_v57 = vld [vmem:[#allocation7 + $0x44] ss:$8 sm:$0xf] }
  0xb1   : > { %v1664_v5 = vrot.slane %v1651_v57, %v3739_v2  ;;  %v1668_v14 = vrot.slane %v1651_v57, %v3755_v13 }
  0xb4   : > { %1098 = vrot.lane.b32.xlu1 %v1085_v60, %s4930_s12  ;;  %1033 = vrot.lane.b32.xlu0 %v1024_v61, %s4928_s22  ;;  %v1660_v60 = vrot.slane %v1651_v57, %v3743_v4  ;;  %v1656_v61 = vrot.slane %v1651_v57, %v3741_v3 }
  0xb8   : > { %1102 = vrot.lane.b32.xlu1 %v1093_v62, %s4930_s12  ;;  %1100 = vrot.lane.b32.xlu0 %v1089_v63, %s4930_s12  ;;  %v1718_v62 = vld [vmem:[#allocation7 + $0x45] ss:$8 sm:$0xf] }
  0xbc   : > { %1104 = vrot.lane.b32.xlu1 %v1097_v0, %s4930_s12  ;;  %1035 = vrot.lane.b32.xlu0 %v1028_v1, %s4928_s22  ;;  %s4934_s22 = smov 1   ;;  %s3542_s12 = smov 7   ;;  %v1723_v1 = vrot.slane %v1718_v62, %v3741_v3 }
  0xc0   : > { %1169 = vrot.lane.b32.xlu1 %v1158_v6, %s4932_s21  ;;  %1167 = vrot.lane.b32.xlu0 %v1154_v7, %s4932_s21 }
  0xc4   : > { %1173 = vrot.lane.b32.xlu1 %v1166_v8, %s4932_s21  ;;  %1171 = vrot.lane.b32.xlu0 %v1162_v9, %s4932_s21  ;;  %s3543_s21 = smov 8   ;;  %v1731_v8 = vrot.slane %v1718_v62, %v3739_v2  ;;  %v1727_v9 = vrot.slane %v1718_v62, %v3743_v4 }
  0xc8   : > { %1269 = vrot.lane.b32.xlu1 %v1258_v11, %s4934_s22  ;;  %1267 = vrot.lane.b32.xlu0 %v1254_v12, %s4934_s22  ;;  %v1735_v12 = vrot.slane %v1718_v62, %v3755_v13 }
  0xcc   : > { %1334 = vrot.lane.b32.xlu1 %v1321_v15, %s3542_s12  ;;  %1271 = vrot.lane.b32.xlu0 %v1262_v16, %s4934_s22  ;;  %v1785_v15 = vld [vmem:[#allocation7 + $0x46] ss:$8 sm:$0xf] }
  0xcd   : > { %v1798_v26 = vrot.slane %v1785_v15, %v3739_v2 }
  0xd0   : > { %1338 = vrot.lane.b32.xlu1 %v1329_v17, %s3542_s12  ;;  %1336 = vrot.lane.b32.xlu0 %v1325_v18, %s3542_s12  ;;  %v1794_v18 = vrot.slane %v1785_v15, %v3743_v4 }
  0xd2   : > { %v3865_v22 = vpop.permute.xlu1 %352  ;;  %v3867_v23 = vpop.permute.xlu0 %348 }
  0xd4   : > { %1340 = vrot.lane.b32.xlu1 %v1333_v19, %s3542_s12  ;;  %1273 = vrot.lane.b32.xlu0 %v1266_v20, %s4934_s22  ;;  %s3544_s22 = smov 9   ;;  %v1790_v19 = vrot.slane %v1785_v15, %v3741_v3  ;;  %v1852_v20 = vld [vmem:[#allocation7 + $0x47] ss:$8 sm:$0xf] }
  0xd5   : > { %v1869_v39 = vrot.slane %v1852_v20, %v3755_v13 }
  0xd6   : > { %v3873_v27 = vpop.permute.xlu1 %417  ;;  %v3875_v28 = vpop.permute.xlu0 %350 }
  0xd8   : > { %1403 = vrot.lane.b32.xlu1 %v1392_v24, %s3543_s21  ;;  %1401 = vrot.lane.b32.xlu0 %v1388_v25, %s3543_s21  ;;  %v1857_v25 = vrot.slane %v1852_v20, %v3741_v3 }
  0xda   : > { %v3881_v31 = vpop.permute.xlu1 %421  ;;  %v3883_v32 = vpop.permute.xlu0 %419 }
  0xdc   : > { %1468 = vrot.lane.b32.xlu1 %v1455_v29, %s3544_s22  ;;  %1405 = vrot.lane.b32.xlu0 %v1396_v30, %s3543_s21 }
  0xde   : > { %v3889_v35 = vpop.permute.xlu1 %423  ;;  %v3891_v36 = vpop.permute.xlu0 %354 }
  0xe0   : > { %1472 = vrot.lane.b32.xlu1 %v1463_v33, %s3544_s22  ;;  %1470 = vrot.lane.b32.xlu0 %v1459_v34, %s3544_s22  ;;  %v1865_v33 = vrot.slane %v1852_v20, %v3739_v2  ;;  %v1861_v34 = vrot.slane %v1852_v20, %v3743_v4 }
  0xe2   : > { %v3897_v40 = vpop.permute.xlu1 %488  ;;  %v3899_v41 = vpop.permute.xlu0 %486 }
  0xe4   : > { %1474 = vrot.lane.b32.xlu1 %v1467_v37, %s3544_s22  ;;  %1407 = vrot.lane.b32.xlu0 %v1400_v38, %s3543_s21 }
  0xe6   : > { %v3905_v45 = vpop.permute.xlu1 %555  ;;  %v3907_v46 = vpop.permute.xlu0 %490 }
  0xe8   : > { %1537 = vrot.lane.b32.xlu1 %v1526_v42, %s4963_s30  ;;  %1535 = vrot.lane.b32.xlu0 %v1522_v43, %s4963_s30  ;;  %v1802_v42 = vrot.slane %v1785_v15, %v3755_v13  ;;  %v1919_v43 = vld [vmem:[#allocation7 + $0x60] ss:$8 sm:$0xf]  ;;  %v2053_v15 = vld [vmem:[#allocation7 + $0x62] ss:$8 sm:$0xf] }
  0xe9   : > { %v2062_v20 = vrot.slane %v2053_v15, %v3743_v4 }
  0xea   : > { %v3913_v49 = vpop.permute.xlu1 %559  ;;  %v3915_v50 = vpop.permute.xlu0 %557 }
  0xec   : > { %1602 = vrot.lane.b32.xlu1 %v1589_v47, %s3529_s9  ;;  %1539 = vrot.lane.b32.xlu0 %v1530_v48, %s4963_s30  ;;  %v1928_v48 = vrot.slane %v1919_v43, %v3743_v4 }
  0xee   : > { %v3921_v53 = vpop.permute.xlu1 %561  ;;  %v3923_v54 = vpop.permute.xlu0 %492 }
  0xf0   : > { %1606 = vrot.lane.b32.xlu1 %v1597_v51, %s3529_s9  ;;  %1604 = vrot.lane.b32.xlu0 %v1593_v52, %s3529_s9  ;;  %v1924_v51 = vrot.slane %v1919_v43, %v3741_v3  ;;  %v1986_v52 = vld [vmem:[#allocation7 + $0x61] ss:$8 sm:$0xf] }
  0xf1   : > { %v1991_v57 = vrot.slane %v1986_v52, %v3741_v3 }
  0xf2   : > { %v3929_v58 = vpop.permute.xlu1 %626  ;;  %v3931_v59 = vpop.permute.xlu0 %624 }
  0xf4   : > { %1608 = vrot.lane.b32.xlu1 %v1601_v55, %s3529_s9  ;;  %1541 = vrot.lane.b32.xlu0 %v1534_v56, %s4963_s30 }
  0xf6   : > { %v3937_v63 = vpop.permute.xlu1 %692  ;;  %v3939_v0 = vpop.permute.xlu0 %628 }
  0xf8   : > { %1671 = vrot.lane.b32.xlu1 %v1660_v60, %s3530_s16  ;;  %1669 = vrot.lane.b32.xlu0 %v1656_v61, %s3530_s16  ;;  %v1932_v60 = vrot.slane %v1919_v43, %v3739_v2 }
  0xfa   : > { %v3945_v6 = vpop.permute.xlu1 %696  ;;  %v3947_v7 = vpop.permute.xlu0 %694 }
  0xfc   : > { %1736 = vrot.lane.b32.xlu1 %v1723_v1, %s3531_s14  ;;  %1673 = vrot.lane.b32.xlu0 %v1664_v5, %s3530_s16  ;;  %v1999_v1 = vrot.slane %v1986_v52, %v3739_v2  ;;  %v1995_v5 = vrot.slane %v1986_v52, %v3743_v4 }
  0xfe   : > { %v3953_v10 = vpop.permute.xlu1 %698  ;;  %v3955_v11 = vpop.permute.xlu0 %630 }
 0x100   : > { %1740 = vrot.lane.b32.xlu1 %v1731_v8, %s3531_s14  ;;  %1738 = vrot.lane.b32.xlu0 %v1727_v9, %s3531_s14 }
 0x102   : > { %v3961_v16 = vpop.permute.xlu1 %761  ;;  %v3963_v17 = vpop.permute.xlu0 %759 }
 0x104   : > { %1742 = vrot.lane.b32.xlu1 %v1735_v12, %s3531_s14  ;;  %1675 = vrot.lane.b32.xlu0 %v1668_v14, %s3530_s16  ;;  %v2003_v12 = vrot.slane %v1986_v52, %v3755_v13  ;;  %v1936_v14 = vrot.slane %v1919_v43, %v3755_v13  ;;  %v358_v43 = vsel %vm356_vm0, %v3875_v28, %v3865_v22 }
 0x105   : > { %v2070_v52 = vrot.slane %v2053_v15, %v3755_v13 }
 0x106   : > { %v3969_v21 = vpop.permute.xlu1 %826  ;;  %v3971_v24 = vpop.permute.xlu0 %763 }
 0x108   : > { %1805 = vrot.lane.b32.xlu1 %v1794_v18, %s3532_s15  ;;  %1803 = vrot.lane.b32.xlu0 %v1790_v19, %s3532_s15 }
 0x10a   : > { %v3977_v29 = vpop.permute.xlu1 %830  ;;  %v3979_v30 = vpop.permute.xlu0 %828 }
 0x10c   : > { %1870 = vrot.lane.b32.xlu1 %v1857_v25, %s3533_s29  ;;  %1807 = vrot.lane.b32.xlu0 %v1798_v26, %s3532_s15  ;;  %v2058_v25 = vrot.slane %v2053_v15, %v3741_v3  ;;  %v434_v3 = vmul.f32 0.0, %v3873_v27 }
 0x10e   : > { %v3985_v37 = vpop.permute.xlu1 %832  ;;  %v3987_v38 = vpop.permute.xlu0 %765 }
 0x110   : > { %1874 = vrot.lane.b32.xlu1 %v1865_v33, %s3533_s29  ;;  %1872 = vrot.lane.b32.xlu0 %v1861_v34, %s3533_s29  ;;  %v4038_v34 = vld [vmem:[%s3729_s23] sm:$0xff] }
 0x112   : > { %v3993_v44 = vpop.permute.xlu1 %895  ;;  %v3995_v47 = vpop.permute.xlu0 %893 }
 0x114   : > { %1876 = vrot.lane.b32.xlu1 %v1869_v39, %s3533_s29  ;;  %1809 = vrot.lane.b32.xlu0 %v1802_v42, %s3532_s15  ;;  %v4041_v39 = vld [vmem:[%s3729_s23 + $0x8] sm:$0xff]  ;;  %v357_v42 = vsel %vm356_vm0, %v3867_v23, %v3875_v28 }
 0x115   : > { %v367_v28 = vmul.f32 %v358_v43, %v4041_v39 }
 0x116   : > { %v4001_v55 = vpop.permute.xlu1 %960  ;;  %v4003_v56 = vpop.permute.xlu0 %897 }
 0x118   : > { %1939 = vrot.lane.b32.xlu1 %v1928_v48, %s3534_s20  ;;  %1937 = vrot.lane.b32.xlu0 %v1924_v51, %s3534_s20  ;;  %v426_v48 = vsel %vm425_vm1, %v3873_v27, %v3883_v32  ;;  %v427_v51 = vsel %vm425_vm1, %v3883_v32, %v3881_v31  ;;  %v4068_v32 = vld [vmem:[%s3729_s23 + $0x10] sm:$0xff] }
 0x11a   : > { %v4009_v61 = vpop.permute.xlu1 %964  ;;  %v4011_v62 = vpop.permute.xlu0 %962 }
 0x11c   : > { %2004 = vrot.lane.b32.xlu1 %v1991_v57, %s3535_s11  ;;  %1941 = vrot.lane.b32.xlu0 %v1932_v60, %s3534_s20  ;;  %v2066_v57 = vrot.slane %v2053_v15, %v3739_v2  ;;  %v366_v60 = vmul.f32 %v357_v42, %v4038_v34  ;;  %v359_v15 = vsel %vm356_vm0, %v3865_v22, %v3891_v36 }
 0x11e   : > { %v4017_v8 = vpop.permute.xlu1 %966  ;;  %v4019_v9 = vpop.permute.xlu0 %899 }
 0x120   : > { %2008 = vrot.lane.b32.xlu1 %v1999_v1, %s3535_s11  ;;  %2006 = vrot.lane.b32.xlu0 %v1995_v5, %s3535_s11  ;;  %v435_v1 = vmul.f32 %v426_v48, %v4038_v34  ;;  %v436_v5 = vmul.f32 %v427_v51, %v4041_v39  ;;  %v368_v48 = vmul.f32 %v359_v15, %v4068_v32 }
 0x122   : > { %v4025_v18 = vpop.permute.xlu1 %1031  ;;  %v4027_v19 = vpop.permute.xlu0 %1029  ;;  %v3082_v42 = vpack.i.bf16 %v436_v5, %v435_v1 }
 0x124   : > { %2010 = vrot.lane.b32.xlu1 %v2003_v12, %s3535_s11  ;;  %1943 = vrot.lane.b32.xlu0 %v1936_v14, %s3534_s20 }
 0x126   : > { %v4033_v26 = vpop.permute.xlu1 %1098  ;;  %v4035_v33 = vpop.permute.xlu0 %1033 }
 0x128   : > { %2073 = vrot.lane.b32.xlu1 %v2062_v20, %s3536_s17  ;;  %2071 = vrot.lane.b32.xlu0 %v2058_v25, %s3536_s17  ;;  %v428_v20 = vsel %vm425_vm1, %v3881_v31, %v3889_v35  ;;  %v3077_v25 = vpack.i.bf16 %v367_v28, %v366_v60  ;;  %v365_v31 = vmul.f32 0.0, %v3867_v23 }
 0x129   : > { %v437_v43 = vmul.f32 %v428_v20, %v4068_v32 }
 0x12a   : > { %v4063_v12 = vpop.permute.xlu1 %1102  ;;  %v4065_v14 = vpop.permute.xlu0 %1100 }
 0x12b   : > { %v3092_v22 = vpack.i.bf16 %v437_v43, %v434_v3 }
 0x12c   : > { %2077 = vrot.lane.b32.xlu1 %v2070_v52, %s3536_s17  ;;  %2075 = vrot.lane.b32.xlu0 %v2066_v57, %s3536_s17  ;;  %v3087_v52 = vpack.i.bf16 %v368_v48, %v365_v31 }
 0x12e   : > { %v4080_v51 = vpop.permute.xlu1 %1104  ;;  %v4082_v2 = vpop.permute.xlu0 %1035 }
 0x130   : > { %3083 = vrot.lane.b32.xlu1 %v3082_v42, %s3535_s11  ;;  %3078 = vrot.lane.b32.xlu0 %v3077_v25, %s3536_s17 }
 0x132   : > { %v4088_v57 = vpop.permute.xlu1 %1169  ;;  %v4090_v60 = vpop.permute.xlu0 %1167 }
 0x134   : > { %3093 = vrot.lane.b32.xlu1 %v3092_v22, %s3535_s11  ;;  %3088 = vrot.lane.b32.xlu0 %v3087_v52, %s3536_s17 }
 0x136   : > { %v4094_v28 = vpop.permute.xlu1 %1173  ;;  %v4096_v1 = vpop.permute.xlu0 %1171 }
 0x13a   : > { %v4098_v23 = vpop.permute.xlu1 %1269  ;;  %v4100_v27 = vpop.permute.xlu0 %1267 }
 0x13b   : > { %4981 = vst [vmem:[#allocation17_spill] sm:$0xff] %v4100_v27 }
 0x13e   : > { %v4102_v5 = vpop.permute.xlu1 %1334  ;;  %v4104_v3 = vpop.permute.xlu0 %1271 }
 0x13f   : > { %4982 = vst [vmem:[#allocation18_spill] sm:$0xff] %v4102_v5 }
 0x142   : > { %v4106_v20 = vpop.permute.xlu1 %1338  ;;  %v4108_v15 = vpop.permute.xlu0 %1336 }
 0x143   : > { %4983 = vst [vmem:[#allocation19_spill] sm:$0xff] %v4106_v20  ;;  %4984 = vst [vmem:[#allocation20_spill] sm:$0xff] %v4108_v15  ;;  %v4131_v20 = vld [vmem:[%s3729_s23 + $0x18] sm:$0xff] }
 0x146   : > { %v4110_v25 = vpop.permute.xlu1 %1340  ;;  %v4112_v42 = vpop.permute.xlu0 %1273 }
 0x147   : > { %4985 = vst [vmem:[#allocation21_spill] sm:$0xff] %v4110_v25  ;;  %4986 = vst [vmem:[#allocation22_spill] sm:$0xff] %v4112_v42 }
 0x14a   : > { %v4114_v43 = vpop.permute.xlu1 %1403  ;;  %v4116_v48 = vpop.permute.xlu0 %1401 }
 0x14b   : > { %4987 = vst [vmem:[#allocation23_spill] sm:$0xff] %v4114_v43  ;;  %4988 = vst [vmem:[#allocation24_spill] sm:$0xff] %v4116_v48  ;;  %v496_v48 = vsel %vm494_vm2, %v3897_v40, %v3907_v46 }
 0x14e   : > { %v4118_v31 = vpop.permute.xlu1 %1468  ;;  %v4120_v22 = vpop.permute.xlu0 %1405 }
 0x14f   : > { %4989 = vst [vmem:[#allocation25_spill] sm:$0xff] %v4118_v31  ;;  %4990 = vst [vmem:[#allocation26_spill] sm:$0xff] %v4120_v22  ;;  %v495_v31 = vsel %vm494_vm2, %v3899_v41, %v3897_v40 }
 0x152   : > { %v4122_v52 = vpop.permute.xlu1 %1472  ;;  %v4124_v13 = vpop.permute.xlu0 %1470 }
 0x153   : > { %4991 = vst [vmem:[#allocation27_spill] sm:$0xff] %v4122_v52  ;;  %4992 = vst [vmem:[#allocation28_spill] sm:$0xff] %v4124_v13  ;;  %v505_v13 = vmul.f32 %v496_v48, %v4041_v39 }
 0x156   : > { %v4126_v4 = vpop.permute.xlu1 %1474  ;;  %v4128_v27 = vpop.permute.xlu0 %1407 }
 0x157   : > { %4993 = vst [vmem:[#allocation29_spill] sm:$0xff] %v4126_v4  ;;  %4994 = vst [vmem:[#allocation30_spill] sm:$0xff] %v4128_v27  ;;  %v369_v4 = vmul.f32 %v3891_v36, %v4131_v20 }
 0x15a   : > { %v4133_v42 = vpop.permute.xlu1 %1537  ;;  %v4135_v43 = vpop.permute.xlu0 %1535 }
 0x15b   : > { %4995 = vst [vmem:[#allocation31_spill] sm:$0xff] %v4133_v42  ;;  %4996 = vst [vmem:[#allocation32_spill] sm:$0xff] %v4135_v43  ;;  %v1543_v52 = vsel %vm356_vm0, %v4135_v43, %v4133_v42  ;;  %v497_v43 = vsel %vm494_vm2, %v3907_v46, %v3923_v54  ;;  %v504_v42 = vmul.f32 %v495_v31, %v4038_v34 }
 0x15c   : > { %v1552_v27 = vmul.f32 %v1543_v52, %v4041_v39  ;;  %v506_v52 = vmul.f32 %v497_v43, %v4068_v32  ;;  %v565_v46 = vsel %vm563_vm3, %v3915_v50, %v3913_v49 }
 0x15d   : > { %v3107_v36 = vpack.i.bf16 %v505_v13, %v504_v42  ;;  %v438_v13 = vmul.f32 %v3889_v35, %v4131_v20  ;;  %v503_v42 = vmul.f32 0.0, %v3899_v41  ;;  %v566_v35 = vsel %vm563_vm3, %v3913_v49, %v3921_v53 }
 0x15e   : > { %v3097_v22 = vpack.i.bf16 %v1552_v27, %v369_v4  ;;  %v4150_v25 = vpop.permute.xlu1 %1602  ;;  %v4152_v5 = vpop.permute.xlu0 %1539  ;;  %v564_v4 = vsel %vm563_vm3, %v3905_v45, %v3915_v50 }
 0x15f   : > { %4997 = vst [vmem:[#allocation33_spill] sm:$0xff] %v4152_v5  ;;  %v573_v31 = vmul.f32 %v564_v4, %v4038_v34 }
 0x160   : > { %3098 = vrot.lane.b32.xlu0 %v3097_v22, %s3536_s17  ;;  %v574_v22 = vmul.f32 %v565_v46, %v4041_v39  ;;  %v634_v46 = vsel %vm632_vm4, %v3929_v58, %v3939_v0 }
 0x162   : > { %v4160_v40 = vpop.permute.xlu1 %1606  ;;  %v4162_v48 = vpop.permute.xlu0 %1604  ;;  %v3112_v41 = vpack.i.bf16 %v574_v22, %v573_v31 }
 0x163   : > { %4998 = vst [vmem:[#allocation34_spill] sm:$0xff] %v4160_v40  ;;  %v1610_v27 = vsel %vm425_vm1, %v4150_v25, %v4162_v48  ;;  %v3117_v40 = vpack.i.bf16 %v506_v52, %v503_v42 }
 0x164   : > { %v1619_v43 = vmul.f32 %v1610_v27, %v4041_v39  ;;  %3108 = vrot.lane.b32.xlu0 %v3107_v36, %s3534_s20  ;;  %v575_v36 = vmul.f32 %v566_v35, %v4068_v32 }
 0x166   : > { %v3102_v5 = vpack.i.bf16 %v1619_v43, %v438_v13  ;;  %v4180_v50 = vpop.permute.xlu1 %1608  ;;  %v4182_v15 = vpop.permute.xlu0 %1541  ;;  %v633_v13 = vsel %vm632_vm4, %v3931_v59, %v3929_v58  ;;  %v643_v43 = vmul.f32 %v634_v46, %v4041_v39 }
 0x168   : > { %3103 = vrot.lane.b32.xlu1 %v3102_v5, %s3535_s11  ;;  %3118 = vrot.lane.b32.xlu0 %v3117_v40, %s3534_s20  ;;  %v572_v5 = vmul.f32 0.0, %v3905_v45  ;;  %v507_v40 = vmul.f32 %v3923_v54, %v4131_v20  ;;  %v635_v45 = vsel %vm632_vm4, %v3939_v0, %v3955_v11  ;;  %v642_v54 = vmul.f32 %v633_v13, %v4038_v34 }
 0x169   : > { %v701_v0 = vsel %vm592_vm5, %v3947_v7, %v3945_v6 }
 0x16a   : > { %v4190_v4 = vpop.permute.xlu1 %1671  ;;  %v4192_v52 = vpop.permute.xlu0 %1669  ;;  %v3122_v42 = vpack.i.bf16 %v575_v36, %v572_v5  ;;  %v3137_v58 = vpack.i.bf16 %v643_v43, %v642_v54  ;;  %v710_v43 = vmul.f32 %v701_v0, %v4041_v39  ;;  %v768_v0 = vsel %vm523_vm6, %v3961_v16, %v3971_v24 }
 0x16b   : > { %v1677_v49 = vsel %vm494_vm2, %v4192_v52, %v4190_v4 }
 0x16c   : > { %v1686_v27 = vmul.f32 %v1677_v49, %v4041_v39  ;;  %3113 = vrot.lane.b32.xlu1 %v3112_v41, %s3533_s29  ;;  %v644_v41 = vmul.f32 %v635_v45, %v4068_v32  ;;  %v700_v49 = vsel %vm592_vm5, %v3937_v63, %v3947_v7 }
 0x16e   : > { %v3127_v31 = vpack.i.bf16 %v1686_v27, %v507_v40  ;;  %v4209_v22 = vpop.permute.xlu1 %1736  ;;  %v4211_v35 = vpop.permute.xlu0 %1673  ;;  %v576_v40 = vmul.f32 %v3921_v53, %v4131_v20  ;;  %v641_v27 = vmul.f32 0.0, %v3931_v59  ;;  %v702_v53 = vsel %vm592_vm5, %v3945_v6, %v3953_v10 }
 0x170   : > { %3123 = vrot.lane.b32.xlu1 %v3122_v42, %s3533_s29  ;;  %3128 = vrot.lane.b32.xlu0 %v3127_v31, %s3534_s20  ;;  %v709_v42 = vmul.f32 %v700_v49, %v4038_v34  ;;  %v3147_v31 = vpack.i.bf16 %v644_v41, %v641_v27 }
 0x172   : > { %v4220_v36 = vpop.permute.xlu1 %1740  ;;  %v4222_v46 = vpop.permute.xlu0 %1738  ;;  %v3142_v59 = vpack.i.bf16 %v710_v43, %v709_v42  ;;  %v777_v43 = vmul.f32 %v768_v0, %v4041_v39 }
 0x173   : > { %v1744_v5 = vsel %vm563_vm3, %v4209_v22, %v4222_v46 }
 0x174   : > { %v1753_v13 = vmul.f32 %v1744_v5, %v4041_v39  ;;  %3138 = vrot.lane.b32.xlu0 %v3137_v58, %s3532_s15  ;;  %v711_v58 = vmul.f32 %v702_v53, %v4068_v32  ;;  %v708_v5 = vmul.f32 0.0, %v3937_v63  ;;  %v834_v63 = vsel %vm4965_vm7, %v3969_v21, %v3979_v30 }
 0x176   : > { %v3132_v45 = vpack.i.bf16 %v1753_v13, %v576_v40  ;;  %v4240_v7 = vpop.permute.xlu1 %1742  ;;  %v4242_v54 = vpop.permute.xlu0 %1675  ;;  %v645_v40 = vmul.f32 %v3955_v11, %v4131_v20  ;;  %v767_v13 = vsel %vm523_vm6, %v3963_v17, %v3961_v16  ;;  %v3152_v42 = vpack.i.bf16 %v711_v58, %v708_v5 }
 0x177   : > { %v835_v11 = vsel %vm4965_vm7, %v3979_v30, %v3977_v29  ;;  %v769_v16 = vsel %vm523_vm6, %v3971_v24, %v3987_v38  ;;  %v712_v58 = vmul.f32 %v3953_v10, %v4131_v20  ;;  %v836_v24 = vsel %vm4965_vm7, %v3977_v29, %v3985_v37 }
 0x178   : > { %3133 = vrot.lane.b32.xlu1 %v3132_v45, %s3533_s29  ;;  %3148 = vrot.lane.b32.xlu0 %v3147_v31, %s3532_s15  ;;  %v844_v5 = vmul.f32 %v835_v11, %v4041_v39  ;;  %v778_v30 = vmul.f32 %v769_v16, %v4068_v32  ;;  %v902_v11 = vsel %vm385_vm8, %v3993_v44, %v4003_v56  ;;  %v842_v29 = vmul.f32 0.0, %v3969_v21 }
 0x179   : > { %v969_v21 = vsel %vm4962_vm9, %v4001_v55, %v4011_v62 }
 0x17a   : > { %v4250_v49 = vpop.permute.xlu1 %1805  ;;  %v4252_v41 = vpop.permute.xlu0 %1803 }
 0x17b   : > { %v1811_v6 = vsel %vm632_vm4, %v4252_v41, %v4250_v49 }
 0x17c   : > { %v1820_v27 = vmul.f32 %v1811_v6, %v4041_v39  ;;  %3143 = vrot.lane.b32.xlu1 %v3142_v59, %s3531_s14  ;;  %v776_v59 = vmul.f32 %v767_v13, %v4038_v34  ;;  %v843_v6 = vmul.f32 %v834_v63, %v4038_v34  ;;  %v775_v13 = vmul.f32 0.0, %v3963_v17 }
 0x17d   : > { %v901_v17 = vsel %vm385_vm8, %v3995_v47, %v3993_v44  ;;  %v903_v44 = vsel %vm385_vm8, %v4003_v56, %v4019_v9  ;;  %v971_v56 = vsel %vm4962_vm9, %v4009_v61, %v4017_v8 }
 0x17e   : > { %v3157_v31 = vpack.i.bf16 %v1820_v27, %v645_v40  ;;  %v4269_v45 = vpop.permute.xlu1 %1870  ;;  %v4271_v53 = vpop.permute.xlu0 %1807  ;;  %v3162_v0 = vpack.i.bf16 %v777_v43, %v776_v59  ;;  %v3167_v10 = vpack.i.bf16 %v844_v5, %v843_v6  ;;  %v3172_v43 = vpack.i.bf16 %v778_v30, %v775_v13 }
 0x17f   : > { %v779_v59 = vmul.f32 %v3987_v38, %v4131_v20  ;;  %v970_v5 = vsel %vm4962_vm9, %v4011_v62, %v4009_v61  ;;  %v910_v38 = vmul.f32 %v901_v17, %v4038_v34  ;;  %v846_v30 = vmul.f32 %v3985_v37, %v4131_v20 }
 0x180   : > { %3153 = vrot.lane.b32.xlu1 %v3152_v42, %s3531_s14  ;;  %3158 = vrot.lane.b32.xlu0 %v3157_v31, %s3532_s15  ;;  %v845_v42 = vmul.f32 %v836_v24, %v4068_v32  ;;  %v978_v13 = vmul.f32 %v969_v21, %v4038_v34  ;;  %v912_v62 = vmul.f32 %v903_v44, %v4068_v32  ;;  %v977_v21 = vmul.f32 0.0, %v4001_v55 }
 0x181   : > { %vm1066_vm9 = vcmask 64512  }
 0x182   : > { %v4290_v40 = vpop.permute.xlu1 %1874  ;;  %v4292_v27 = vpop.permute.xlu0 %1872  ;;  %v3177_v16 = vpack.i.bf16 %v845_v42, %v842_v29  ;;  %v980_v29 = vmul.f32 %v971_v56, %v4068_v32 }
 0x184   : > { %726 = vrot.lane.b32.xlu1 %v712_v58, %s3531_s14  ;;  %3163 = vrot.lane.b32.xlu0 %v3162_v0, %s3530_s16  ;;  %v911_v58 = vmul.f32 %v902_v11, %v4041_v39  ;;  %v909_v11 = vmul.f32 0.0, %v3995_v47 }
 0x186   : > { %v4301_v31 = vpop.permute.xlu1 %1876  ;;  %v4303_v63 = vpop.permute.xlu0 %1809  ;;  %v3182_v24 = vpack.i.bf16 %v911_v58, %v910_v38  ;;  %v3192_v17 = vpack.i.bf16 %v912_v62, %v909_v11  ;;  %v1039_v58 = vsel %vm1037_vm10, %v4025_v18, %v4035_v33  ;;  %v913_v38 = vmul.f32 %v4019_v9, %v4131_v20 }
 0x187   : > { %v1048_v55 = vmul.f32 %v1039_v58, %v4041_v39  ;;  %v1108_v9 = vsel %vm1106_vm11, %v4065_v14, %v4063_v12 }
 0x188   : > { %3168 = vrot.lane.b32.xlu1 %v3167_v10, %s3529_s9  ;;  %3173 = vrot.lane.b32.xlu0 %v3172_v43, %s3530_s16  ;;  %v979_v10 = vmul.f32 %v970_v5, %v4041_v39 }
 0x18a   : > { %v4317_v0 = vpop.permute.xlu1 %1939  ;;  %v4319_v6 = vpop.permute.xlu0 %1937  ;;  %v3187_v37 = vpack.i.bf16 %v979_v10, %v978_v13  ;;  %v1107_v13 = vsel %vm1106_vm11, %v4033_v26, %v4065_v14  ;;  %v981_v14 = vmul.f32 %v4017_v8, %v4131_v20  ;;  %v1046_v8 = vmul.f32 0.0, %v4027_v19 }
 0x18c   : > { %3178 = vrot.lane.b32.xlu1 %v3177_v16, %s3529_s9  ;;  %793 = vrot.lane.b32.xlu0 %v779_v59, %s3530_s16 }
 0x18e   : > { %v4338_v42 = vpop.permute.xlu1 %2004  ;;  %v4340_v43 = vpop.permute.xlu0 %1941 }
 0x190   : > { %860 = vrot.lane.b32.xlu1 %v846_v30, %s3529_s9  ;;  %3183 = vrot.lane.b32.xlu0 %v3182_v24, %s4963_s30  ;;  %v1038_v30 = vsel %vm1037_vm10, %v4027_v19, %v4025_v18  ;;  %v3197_v24 = vpack.i.bf16 %v980_v29, %v977_v21  ;;  %v1040_v18 = vsel %vm1037_vm10, %v4035_v33, %v4082_v2 }
 0x191   : > { %v1047_v29 = vmul.f32 %v1038_v30, %v4038_v34  ;;  %v1116_v33 = vmul.f32 %v1107_v13, %v4038_v34 }
 0x192   : > { %v2009_v16 = vpop.permute.xlu1 %2008  ;;  %v2007_v59 = vpop.permute.xlu0 %2006 }
 0x193   : > { %v2012_v61 = vsel %vm4965_vm7, %v4338_v42, %v2007_v59  ;;  %v2013_v47 = vsel %vm4965_vm7, %v2007_v59, %v2009_v16  ;;  %v1049_v59 = vmul.f32 %v1040_v18, %v4068_v32  ;;  %v1115_v18 = vmul.f32 0.0, %v4033_v26 }
 0x194   : > { %v4357_v5 = vmul.f32 %v2012_v61, %v4041_v39  ;;  %v4360_v44 = vmul.f32 %v2013_v47, %v4068_v32  ;;  %3188 = vrot.lane.b32.xlu1 %v3187_v37, %s3544_s22  ;;  %3193 = vrot.lane.b32.xlu0 %v3192_v17, %s4963_s30  ;;  %v3202_v17 = vpack.i.bf16 %v1048_v55, %v1047_v29 }
 0x195   : > { %v1109_v47 = vsel %vm1106_vm11, %v4063_v12, %v4080_v51  ;;  %v1177_v12 = vsel %vm1175_vm12, %v4088_v57, %v4096_v1  ;;  %v1176_v29 = vsel %vm1175_vm12, %v4090_v60, %v4088_v57 }
 0x196   : > { %v4375_v62 = vpop.permute.xlu1 %2010  ;;  %v4377_v56 = vpop.permute.xlu0 %1943  ;;  %v1118_v30 = vmul.f32 %v1109_v47, %v4068_v32 }
 0x197   : > { %v4387_v11 = vsel %vm4965_vm7, %v2009_v16, %v4375_v62  ;;  %v4392_v37 = vsel %vm523_vm6, %v4340_v43, %v4377_v56  ;;  %v1117_v16 = vmul.f32 %v1108_v9, %v4041_v39 }
 0x198   : > { %3198 = vrot.lane.b32.xlu1 %v3197_v24, %s3544_s22  ;;  %927 = vrot.lane.b32.xlu0 %v913_v38, %s4963_s30  ;;  %v3212_v24 = vpack.i.bf16 %v1049_v59, %v1046_v8  ;;  %s5022_s30 = smov 119  }
 0x199   : > { %v3207_v38 = vpack.i.bf16 %v1117_v16, %v1116_v33  ;;  %v1178_v33 = vsel %vm1175_vm12, %v4096_v1, %v4094_v28  ;;  %v1186_v16 = vmul.f32 %v1177_v12, %v4041_v39  ;;  %v1119_v1 = vmul.f32 %v4080_v51, %v4131_v20 }
 0x19a   : > { %v2074_v58 = vpop.permute.xlu1 %2073  ;;  %v4402_v61 = vpop.permute.xlu0 %2071 }
 0x19b   : > { %4999 = vst [vmem:[#allocation35_spill] sm:$0xff] %v4402_v61  ;;  %v4409_v21 = vsel %vm385_vm8, %v4402_v61, %v2074_v58 }
 0x19c   : > { %5000 = vst [vmem:[#allocation36_spill] sm:$0xff] %v4409_v21  ;;  %995 = vrot.lane.b32.xlu1 %v981_v14, %s3544_s22  ;;  %3203 = vrot.lane.b32.xlu0 %v3202_v17, %s3543_s21  ;;  %v3217_v14 = vpack.i.bf16 %v1118_v30, %v1115_v18  ;;  %v1050_v17 = vmul.f32 %v4082_v2, %v4131_v20  ;;  %s5011_s22 = smov 127  }
 0x19d   : > { %v1185_v2 = vmul.f32 %v1176_v29, %v4038_v34  ;;  %v1276_v18 = vsel %vm1204_vm13, %v4098_v23, %v4104_v3 }
 0x19e   : > { %v4415_v55 = vpop.permute.xlu1 %2077  ;;  %v2076_v13 = vpop.permute.xlu0 %2075 }
 0x19f   : > { %5001 = vst [vmem:[#allocation37_spill] sm:$0xff] %v4415_v55  ;;  %v4421_v9 = vsel %vm385_vm8, %v2074_v58, %v2076_v13  ;;  %v4425_v19 = vsel %vm385_vm8, %v2076_v13, %v4415_v55  ;;  %v1184_v13 = vmul.f32 0.0, %v4090_v60  ;;  %v3222_v12 = vpack.i.bf16 %v1186_v16, %v1185_v2 }
 0x1a0   : > { %5002 = vst [vmem:[#allocation38_spill] sm:$0xff] %v4421_v9  ;;  %5003 = vst [vmem:[#allocation39_spill] sm:$0xff] %v4425_v19  ;;  %3208 = vrot.lane.b32.xlu1 %v3207_v38, %s3542_s12  ;;  %3213 = vrot.lane.b32.xlu0 %v3212_v24, %s3543_s21  ;;  %v1187_v38 = vmul.f32 %v1178_v33, %v4068_v32  ;;  %v5005_v33 = vld [vmem:[#allocation18_spill] sm:$0xff]  ;;  %v1188_v2 = vmul.f32 %v4094_v28, %v4131_v20 }
 0x1a1   : > { %v1285_v9 = vmul.f32 %v1276_v18, %v4068_v32  ;;  %v5015_v18 = vld [vmem:[#allocation28_spill] sm:$0xff] }
 0x1a2   : > { %v4439_v59 = vpop.permute.xlu1 %3083  ;;  %v4441_v26 = vpop.permute.xlu0 %3078 }
 0x1a3   : > { %v4959_v58 = vunpack.i.h.bf16 %v4439_v59  ;;  %v3085_v47 = vunpack.i.l.bf16 %v4439_v59  ;;  %v4958_v57 = vunpack.i.h.bf16 %v4441_v26  ;;  %v3080_v8 = vunpack.i.l.bf16 %v4441_v26 }
 0x1a4   : > { %3218 = vrot.lane.b32.xlu1 %v3217_v14, %s3542_s12  ;;  %1064 = vrot.lane.b32.xlu0 %v1050_v17, %s3543_s21  ;;  %v5004_v17 = vld [vmem:[#allocation20_spill] sm:$0xff]  ;;  %s5007_s21 = smov 1  }
 0x1a5   : > { %v387_v30 = vsel %vm385_vm8, %v3080_v8, %v4958_v57  ;;  %v456_v24 = vsel %vm4965_vm7, %v3085_v47, %v4959_v58  ;;  %v1342_v10 = vsel %vm1135_vm14, %v5005_v33, %v5004_v17  ;;  %v5006_v57 = vld [vmem:[#allocation19_spill] sm:$0xff] }
 0x1a6   : > { %v4463_v29 = vpop.permute.xlu1 %3093  ;;  %v4465_v51 = vpop.permute.xlu0 %3088  ;;  %v2886_v14 = vpack.c.bf16 %v456_v24, %v387_v30  ;;  %v1343_v58 = vsel %vm1135_vm14, %v5004_v17, %v5006_v57  ;;  %v3227_v30 = vpack.i.bf16 %v1187_v38, %v1184_v13  ;;  %v5008_v24 = vld [vmem:[#allocation17_spill] sm:$0xff]  ;;  %v1351_v61 = vmul.f32 %v1342_v10, %v4041_v39  ;;  %v5010_v13 = vld [vmem:[#allocation22_spill] sm:$0xff] }
 0x1a7   : > { %v3095_v60 = vunpack.i.l.bf16 %v4463_v29  ;;  %v3090_v16 = vunpack.i.l.bf16 %v4465_v51  ;;  %v1275_v19 = vsel %vm1204_vm13, %v5008_v24, %v4098_v23  ;;  %v1352_v28 = vmul.f32 %v1343_v58, %v4068_v32 }
 0x1a8   : > { %1133 = vrot.lane.b32.xlu1 %v1119_v1, %s3542_s12  ;;  %3223 = vrot.lane.b32.xlu0 %v3222_v12, %s5007_s21  ;;  %v5009_v1 = vld [vmem:[#allocation21_spill] sm:$0xff]  ;;  %v1277_v23 = vsel %vm1204_vm13, %v4104_v3, %v5010_v13  ;;  %v1284_v12 = vmul.f32 %v1275_v19, %v4041_v39  ;;  %s5012_s12 = smov 121  }
 0x1a9   : > { %2887 = vmatprep.subr.bf16.mxu0 %v2886_v14  ;;  %v386_v55 = vsel %vm385_vm8, %v3090_v16, %v3080_v8  ;;  %v455_v17 = vsel %vm4965_vm7, %v3095_v60, %v3085_v47  ;;  %v1344_v38 = vsel %vm1135_vm14, %v5006_v57, %v5009_v1  ;;  %v3237_v10 = vpack.i.bf16 %v1352_v28, %v1351_v61  ;;  %v5014_v61 = vld [vmem:[#allocation23_spill] sm:$0xff]  ;;  %v5016_v14 = vld [vmem:[#allocation25_spill] sm:$0xff] }
 0x1aa   : > { %v2888_v21 = vpack.c.bf16 %v455_v17, %v386_v55  ;;  %v3232_v47 = vpack.i.bf16 %v1285_v9, %v1284_v12  ;;  %v1353_v58 = vmul.f32 %v1344_v38, %v4131_v20  ;;  %v1286_v55 = vmul.f32 %v1277_v23, %v4131_v20  ;;  %v5017_v16 = vld [vmem:[#allocation27_spill] sm:$0xff]  ;;  %v5019_v12 = vld [vmem:[#allocation29_spill] sm:$0xff] }
 0x1ab   : > { %v1283_v57 = vmul.f32 %v5008_v24, %v4038_v34  ;;  %v1350_v8 = vmul.f32 %v5005_v33, %v4038_v34  ;;  %v1476_v60 = vsel %vm997_vm15, %v5016_v14, %v5015_v18  ;;  %v1477_v33 = vsel %vm997_vm15, %v5015_v18, %v5017_v16  ;;  %v5024_v18 = vld [vmem:[#allocation31_spill] sm:$0xff] }
 0x1ac   : > { %3228 = vrot.lane.b32.xlu1 %v3227_v30, %s5007_s21  ;;  %1202 = vrot.lane.b32.xlu0 %v1188_v2, %s5007_s21  ;;  %v1354_v2 = vmul.f32 0.0, %v5009_v1  ;;  %v5018_v30 = vld [vmem:[#allocation24_spill] sm:$0xff]  ;;  %v1287_v17 = vmul.f32 0.0, %v5010_v13  ;;  %v1485_v38 = vmul.f32 %v1476_v60, %v4041_v39  ;;  %v1486_v23 = vmul.f32 %v1477_v33, %v4068_v32  ;;  %s5021_s21 = smov 120  }
 0x1ad   : > { %2889 = vmatpush1.bf16.msra.mxu0 %v2888_v21  ;;  %v3247_v3 = vpack.i.bf16 %v1353_v58, %v1350_v8  ;;  %v3242_v19 = vpack.i.bf16 %v1286_v55, %v1283_v57  ;;  %v5013_v21 = vld [vmem:[#allocation26_spill] sm:$0xff]  ;;  %v1409_v24 = vsel %vm1066_vm9, %v5018_v30, %v5014_v61 }
 0x1ae   : > { %v1410_v9 = vsel %vm1066_vm9, %v5014_v61, %v5013_v21  ;;  %v1418_v58 = vmul.f32 %v1409_v24, %v4041_v39  ;;  %v3257_v55 = vpack.i.bf16 %v1486_v23, %v1485_v38  ;;  %v1618_v38 = vmul.f32 %v4150_v25, %v4038_v34 }
 0x1af   : > { %v1419_v28 = vmul.f32 %v1410_v9, %v4068_v32  ;;  %v5023_v9 = vld [vmem:[#allocation33_spill] sm:$0xff] }
 0x1b0   : > { %3233 = vrot.lane.b32.xlu1 %v3232_v47, %s5011_s22  ;;  %3238 = vrot.lane.b32.xlu0 %v3237_v10, %s5012_s12  ;;  %v1478_v47 = vsel %vm997_vm15, %v5017_v16, %v5019_v12  ;;  %v5020_v10 = vld [vmem:[#allocation30_spill] sm:$0xff]  ;;  %v1544_v60 = vsel %vm356_vm0, %v5024_v18, %v5023_v9  ;;  %v1545_v23 = vsel %vm356_vm0, %v5023_v9, %v4182_v15  ;;  %v1756_v9 = vmul.f32 0.0, %v4240_v7 }
 0x1b1   : > { %v1411_v1 = vsel %vm1066_vm9, %v5013_v21, %v5020_v10  ;;  %v3252_v13 = vpack.i.bf16 %v1419_v28, %v1418_v58  ;;  %v1487_v57 = vmul.f32 %v1478_v47, %v4131_v20  ;;  %v5025_v16 = vld [vmem:[#allocation34_spill] sm:$0xff]  ;;  %v1421_v24 = vmul.f32 0.0, %v5020_v10 }
 0x1b2   : > { %v1420_v8 = vmul.f32 %v1411_v1, %v4131_v20  ;;  %v1611_v33 = vsel %vm425_vm1, %v4162_v48, %v5025_v16  ;;  %v1612_v48 = vsel %vm425_vm1, %v5025_v16, %v4180_v50  ;;  %v1622_v10 = vmul.f32 0.0, %v4180_v50 }
 0x1b3   : > { %v1555_v1 = vmul.f32 0.0, %v4182_v15  ;;  %v1621_v25 = vmul.f32 %v1612_v48, %v4131_v20  ;;  %v1554_v58 = vmul.f32 %v1545_v23, %v4131_v20  ;;  %v1689_v18 = vmul.f32 0.0, %v4242_v54 }
 0x1b4   : > { %3243 = vrot.lane.b32.xlu1 %v3242_v19, %s5011_s22  ;;  %3248 = vrot.lane.b32.xlu0 %v3247_v3, %s5012_s12  ;;  %v1417_v3 = vmul.f32 %v5018_v30, %v4038_v34  ;;  %v1484_v19 = vmul.f32 %v5016_v14, %v4038_v34  ;;  %v1553_v14 = vmul.f32 %v1544_v60, %v4068_v32  ;;  %v1488_v30 = vmul.f32 0.0, %v5019_v12 }
 0x1b5   : > { %v1879_v60 = vsel %vm592_vm5, %v4292_v27, %v4290_v40  ;;  %v1823_v48 = vmul.f32 0.0, %v4303_v63  ;;  %v3096_v23 = vunpack.i.h.bf16 %v4463_v29  ;;  %v5027_v29 = vunpack.i.h.bf16 %v4441_v26 }
 0x1b6   : > { %v3267_v21 = vpack.i.bf16 %v1487_v57, %v1484_v19  ;;  %v3262_v61 = vpack.i.bf16 %v1420_v8, %v1417_v3  ;;  %v3287_v57 = vpack.i.bf16 %v1622_v10, %v1621_v25  ;;  %v3282_v8 = vpack.i.bf16 %v1555_v1, %v1554_v58 }
 0x1b7   : > { %v1685_v3 = vmul.f32 %v4192_v52, %v4038_v34  ;;  %v1679_v19 = vsel %vm494_vm2, %v4211_v35, %v4242_v54  ;;  %v1956_v26 = vmul.f32 %v4392_v37, %v4131_v20  ;;  %v2020_v37 = vmul.f32 %v4338_v42, %v4038_v34 }
 0x1b8   : > { %1301 = vrot.lane.b32.xlu1 %v1287_v17, %s5011_s22  ;;  %1368 = vrot.lane.b32.xlu0 %v1354_v2, %s5012_s12  ;;  %v1620_v2 = vmul.f32 %v1611_v33, %v4068_v32  ;;  %v5026_v17 = vld [vmem:[#allocation32_spill] sm:$0xff] }
 0x1b9   : > { %v1551_v28 = vmul.f32 %v5026_v17, %v4038_v34 }
 0x1ba   : > { %v3277_v47 = vpack.i.bf16 %v1618_v38, %v1620_v2  ;;  %v1819_v2 = vmul.f32 %v4252_v41, %v4038_v34 }
 0x1bb   : > { %v3272_v12 = vpack.i.bf16 %v1551_v28, %v1553_v14 }
 0x1bc   : > { %3253 = vrot.lane.b32.xlu1 %v3252_v13, %s5021_s21  ;;  %3258 = vrot.lane.b32.xlu0 %v3257_v55, %s5022_s30  ;;  %v1678_v13 = vsel %vm494_vm2, %v4190_v4, %v4211_v35  ;;  %v1745_v55 = vsel %vm563_vm3, %v4222_v46, %v4220_v36  ;;  %v1752_v4 = vmul.f32 %v4209_v22, %v4038_v34 }
 0x1bd   : > { %v1687_v50 = vmul.f32 %v1678_v13, %v4068_v32  ;;  %v1754_v15 = vmul.f32 %v1745_v55, %v4068_v32  ;;  %v1746_v46 = vsel %vm563_vm3, %v4220_v36, %v4240_v7  ;;  %v1688_v22 = vmul.f32 %v1679_v19, %v4131_v20 }
 0x1be   : > { %v1755_v52 = vmul.f32 %v1746_v46, %v4131_v20  ;;  %v1812_v36 = vsel %vm632_vm4, %v4250_v49, %v4271_v53  ;;  %v1878_v35 = vsel %vm592_vm5, %v4269_v45, %v4292_v27  ;;  %v1888_v49 = vmul.f32 %v1879_v60, %v4068_v32 }
 0x1bf   : > { %v1821_v7 = vmul.f32 %v1812_v36, %v4068_v32  ;;  %v3302_v54 = vpack.i.bf16 %v1689_v18, %v1688_v22  ;;  %v1887_v33 = vmul.f32 %v1878_v35, %v4041_v39  ;;  %v1880_v27 = vsel %vm592_vm5, %v4290_v40, %v4301_v31 }
 0x1c0   : > { %3263 = vrot.lane.b32.xlu1 %v3262_v61, %s5021_s21  ;;  %3268 = vrot.lane.b32.xlu0 %v3267_v21, %s5022_s30  ;;  %v3292_v21 = vpack.i.bf16 %v1685_v3, %v1687_v50  ;;  %v3297_v61 = vpack.i.bf16 %v1752_v4, %v1754_v15  ;;  %v3307_v16 = vpack.i.bf16 %v1756_v9, %v1755_v52  ;;  %v5028_v13 = vunpack.i.h.bf16 %v4439_v59 }
 0x1c1   : > { %v3312_v17 = vpack.i.bf16 %v1819_v2, %v1821_v7  ;;  %v3317_v28 = vpack.i.bf16 %v1888_v49, %v1887_v33  ;;  %v1889_v38 = vmul.f32 %v1880_v27, %v4131_v20  ;;  %v1945_v40 = vsel %vm523_vm6, %v4319_v6, %v4317_v0 }
 0x1c2   : > { %v1954_v1 = vmul.f32 %v1945_v40, %v4041_v39  ;;  %v457_v55 = vsel %vm4965_vm7, %v5028_v13, %v3096_v23  ;;  %v2023_v22 = vmul.f32 %v4387_v11, %v4131_v20  ;;  %v2120_v11 = vld [vmem:[%s4916_s1 + $0x8] sm:$0xff]  ;;  %v1957_v49 = vmul.f32 0.0, %v4377_v56 }
 0x1c4   : > { %1435 = vrot.lane.b32.xlu1 %v1421_v24, %s5021_s21  ;;  %1502 = vrot.lane.b32.xlu0 %v1488_v30, %s5022_s30  ;;  %v1813_v30 = vsel %vm632_vm4, %v4271_v53, %v4303_v63  ;;  %v1886_v24 = vmul.f32 %v4269_v45, %v4038_v34  ;;  %v1946_v53 = vsel %vm523_vm6, %v4317_v0, %v4340_v43  ;;  %v3091_v45 = vunpack.i.h.bf16 %v4465_v51  ;;  %s2840_s21 = sshll.u32 %s3725_s10, 6 }
 0x1c5   : > { %v1822_v41 = vmul.f32 %v1813_v30, %v4131_v20  ;;  %v1955_v25 = vmul.f32 %v1946_v53, %v4068_v32  ;;  %v1890_v43 = vmul.f32 0.0, %v4301_v31  ;;  %v3347_v33 = vpack.i.bf16 %v2023_v22, %v2020_v37  ;;  %s309_s30 = scalar_lea.vmem [#allocation9], %s2840_s21 }
 0x1c6   : > { %v388_v51 = vsel %vm385_vm8, %v5027_v29, %v3091_v45  ;;  %v2024_v30 = vmul.f32 0.0, %v4375_v62  ;;  %v3545_v29 = vmov 0  }
 0x1c7   : > { %v3327_v10 = vpack.i.bf16 %v1823_v48, %v1822_v41  ;;  %v3332_v3 = vpack.i.bf16 %v1955_v25, %v1954_v1  ;;  %3352 = vset.pattern.permute.xlu1 %v3545_v29  ;;  %3353 = vset.pattern.permute.xlu0 %v3545_v29 }
 0x1c8   : > { %3273 = vrot.lane.b32.xlu1 %v3272_v12, %s3536_s17  ;;  %3278 = vrot.lane.b32.xlu0 %v3277_v47, %s3535_s11  ;;  %v3322_v47 = vpack.i.bf16 %v1889_v38, %v1886_v24  ;;  %v5030_v24 = vld [vmem:[#allocation36_spill] sm:$0xff] }
 0x1cc   : > { %3283 = vrot.lane.b32.xlu1 %v3282_v8, %s3536_s17  ;;  %3288 = vrot.lane.b32.xlu0 %v3287_v57, %s3535_s11  ;;  %v1953_v8 = vmul.f32 %v4319_v6, %v4038_v34 }
 0x1ce   : > { %v3342_v18 = vpack.i.bf16 %v1956_v26, %v1953_v8 }
 0x1d0   : > { %3293 = vrot.lane.b32.xlu1 %v3292_v21, %s3534_s20  ;;  %3298 = vrot.lane.b32.xlu0 %v3297_v61, %s3533_s29  ;;  %v2940_v61 = vpack.c.bf16 %v457_v55, %v388_v51  ;;  %v5034_v55 = vld [vmem:[#allocation37_spill] sm:$0xff] }
 0x1d2   : > { %v4608_v14 = vpop.permute.xlu0 %3098 }
 0x1d3   : > { %v3100_v63 = vunpack.i.l.bf16 %v4608_v14 }
 0x1d4   : > { %3303 = vrot.lane.b32.xlu1 %v3302_v54, %s3534_s20  ;;  %3308 = vrot.lane.b32.xlu0 %v3307_v16, %s3533_s29  ;;  %v5029_v16 = vpack.i.bf16 %v4360_v44, %v4357_v5 }
 0x1d5   : > { %v389_v57 = vsel %vm385_vm8, %v3091_v45, %v3100_v63  ;;  %v5033_v45 = vld [vmem:[#allocation38_spill] sm:$0xff] }
 0x1d6   : > { %v4633_v12 = vpop.permute.xlu0 %3108  ;;  %v2089_v63 = vmul.f32 %v5033_v45, %v4068_v32 }
 0x1d7   : > { %v3111_v50 = vunpack.i.h.bf16 %v4633_v12  ;;  %v3110_v15 = vunpack.i.l.bf16 %v4633_v12  ;;  %v5035_v12 = vld [vmem:[#allocation39_spill] sm:$0xff] }
 0x1d8   : > { %3313 = vrot.lane.b32.xlu1 %v3312_v17, %s3532_s15  ;;  %3318 = vrot.lane.b32.xlu0 %v3317_v28, %s3531_s14  ;;  %v2088_v17 = vmul.f32 %v5030_v24, %v4041_v39 }
 0x1d9   : > { %v525_v6 = vsel %vm523_vm6, %v3110_v15, %v3111_v50 }
 0x1da   : > { %v4640_v58 = vpop.permute.xlu1 %3103  ;;  %v3119_v4 = vpop.permute.xlu0 %3118 }
 0x1db   : > { %v3105_v0 = vunpack.i.l.bf16 %v4640_v58  ;;  %v3120_v9 = vunpack.i.l.bf16 %v3119_v4  ;;  %v3121_v56 = vunpack.i.h.bf16 %v3119_v4 }
 0x1dc   : > { %3323 = vrot.lane.b32.xlu1 %v3322_v47, %s3531_s14  ;;  %3328 = vrot.lane.b32.xlu0 %v3327_v10, %s3532_s15  ;;  %s5031_s15 = smov 55  }
 0x1dd   : > { %v458_v31 = vsel %vm4965_vm7, %v3096_v23, %v3105_v0  ;;  %v524_v42 = vsel %vm523_vm6, %v3120_v9, %v3110_v15  ;;  %vm2243_vm7 = vcmask 719872   ;;  %v5032_v23 = vld [vmem:[#allocation35_spill] sm:$0xff]  ;;  %v2091_v15 = vmul.f32 0.0, %v5034_v55 }
 0x1de   : > { %v3114_v46 = vpop.permute.xlu1 %3113  ;;  %v2938_v59 = vpack.c.bf16 %v458_v31, %v389_v57  ;;  %2841 = vmatprep.mubr.msk.f32.mxu0 %vm2243_vm7, %v2120_v11  ;;  %2843 = vmatprep.mubr.msk.f32.mxu1 %vm2243_vm7, %v2120_v11  ;;  %v2087_v39 = vmul.f32 %v5032_v23, %v4038_v34  ;;  %v2090_v57 = vmul.f32 %v5035_v12, %v4131_v20  ;;  %v2231_v20 = vld [vmem:[%s4919_s4] sm:$0xff] }
 0x1df   : > { %v3116_v19 = vunpack.i.h.bf16 %v3114_v46  ;;  %v3115_v21 = vunpack.i.l.bf16 %v3114_v46 }
 0x1e0   : > { %1904 = vrot.lane.b32.xlu1 %v1890_v43, %s3531_s14  ;;  %3333 = vrot.lane.b32.xlu0 %v3332_v3, %s3530_s16  ;;  %v526_v43 = vsel %vm523_vm6, %v3111_v50, %v3121_v56  ;;  %s2863_s14 = sshll.u32 %s3610_s28, 10  ;;  %s2734_s28 = scalar_lea.sflag [#allocation6], %s3725_s10 }
 0x1e1   : > { %2939 = vmatprep.subr.bf16.mxu1 %v2938_v59  ;;  %v594_v52 = vsel %vm592_vm5, %v3115_v21, %v3116_v19  ;;  %s4868_s29 = scalar_lea.hbm %s4922_s7, %s2863_s14 }
 0x1e2   : > { %2941 = vmatpush1.bf16.msra.mxu1 %v2940_v61  ;;  %v3124_v36 = vpop.permute.xlu1 %3123  ;;  %v4670_v35 = vpop.permute.xlu0 %3128  ;;  %v2890_v60 = vpack.c.bf16 %v594_v52, %v525_v6  ;;  %v2232_v52 = vld [vmem:[%s4919_s4 + $0x8] sm:$0xff] }
 0x1e3   : > { %v3125_v7 = vunpack.i.l.bf16 %v3124_v36  ;;  %v3130_v5 = vunpack.i.l.bf16 %v4670_v35  ;;  %v3126_v27 = vunpack.i.h.bf16 %v3124_v36 }
 0x1e4   : > { %3338 = vrot.lane.b32.xlu1 %v5029_v16, %s3529_s9  ;;  %3343 = vrot.lane.b32.xlu0 %v3342_v18, %s3530_s16 }
 0x1e5   : > { %2891 = vmatprep.subr.bf16.mxu0 %v2890_v60  ;;  %v593_v54 = vsel %vm592_vm5, %v3125_v7, %v3115_v21  ;;  %v527_v41 = vsel %vm523_vm6, %v3121_v56, %v3130_v5  ;;  %v595_v62 = vsel %vm592_vm5, %v3116_v19, %v3126_v27 }
 0x1e6   : > { %v2892_v2 = vpack.c.bf16 %v593_v54, %v524_v42  ;;  %v3139_v44 = vpop.permute.xlu0 %3138  ;;  %v2944_v34 = vpack.c.bf16 %v595_v62, %v526_v43 }
 0x1e7   : > { %v3141_v48 = vunpack.i.h.bf16 %v3139_v44  ;;  %v3140_v40 = vunpack.i.l.bf16 %v3139_v44 }
 0x1e8   : > { %3348 = vrot.lane.b32.xlu1 %v3347_v33, %s3529_s9  ;;  %1971 = vrot.lane.b32.xlu0 %v1957_v49, %s3530_s16 }
 0x1e9   : > { %2893 = vmatpush1.bf16.msra.mxu0 %v2892_v2  ;;  %v662_v32 = vsel %vm632_vm4, %v3140_v40, %v3141_v48 }
 0x1ea   : > { %v4691_v28 = vpop.permute.xlu1 %3133  ;;  %v3149_v47 = vpop.permute.xlu0 %3148 }
 0x1eb   : > { %v3135_v38 = vunpack.i.l.bf16 %v4691_v28  ;;  %v3150_v51 = vunpack.i.l.bf16 %v3149_v47  ;;  %v3151_v46 = vunpack.i.h.bf16 %v3149_v47 }
 0x1ec   : > { %2038 = vrot.lane.b32.xlu1 %v2024_v30, %s3529_s9  ;;  %2099 = vrot.lane.b32.xlu0 %v2088_v17, %s5031_s15 }
 0x1ed   : > { %v596_v53 = vsel %vm592_vm5, %v3126_v27, %v3135_v38  ;;  %v661_v59 = vsel %vm632_vm4, %v3150_v51, %v3140_v40  ;;  %v663_v36 = vsel %vm632_vm4, %v3141_v48, %v3151_v46 }
 0x1ee   : > { %v3144_v10 = vpop.permute.xlu1 %3143  ;;  %v2942_v1 = vpack.c.bf16 %v596_v53, %v527_v41 }
 0x1ef   : > { %v3146_v25 = vunpack.i.h.bf16 %v3144_v10  ;;  %v3145_v0 = vunpack.i.l.bf16 %v3144_v10 }
 0x1f0   : > { %2101 = vrot.lane.b32.xlu1 %v2089_v63, %s5031_s15  ;;  %2097 = vrot.lane.b32.xlu0 %v2087_v39, %s5031_s15 }
 0x1f1   : > { %2943 = vmatprep.subr.bf16.mxu1 %v2942_v1  ;;  %v729_v13 = vsel %vm563_vm3, %v3145_v0, %v3146_v25 }
 0x1f2   : > { %2945 = vmatpush1.bf16.msra.mxu1 %v2944_v34  ;;  %v3154_v50 = vpop.permute.xlu1 %3153  ;;  %v4713_v31 = vpop.permute.xlu0 %3158  ;;  %v2894_v8 = vpack.c.bf16 %v729_v13, %v662_v32 }
 0x1f3   : > { %v3156_v3 = vunpack.i.h.bf16 %v3154_v50  ;;  %v3155_v26 = vunpack.i.l.bf16 %v3154_v50  ;;  %v3160_v4 = vunpack.i.l.bf16 %v4713_v31 }
 0x1f4   : > { %2103 = vrot.lane.b32.xlu1 %v2090_v57, %s5031_s15  ;;  %2105 = vrot.lane.b32.xlu0 %v2091_v15, %s5031_s15  ;;  %s2747_s15 = sshll.u32 %s309_s30, 4  ;;  %s4870_s15 = int_to_ptr.vmem [resolvable:$true] %s2747_s15 }
 0x1f5   : > { %2895 = vmatprep.subr.bf16.mxu0 %v2894_v8  ;;  %v728_v19 = vsel %vm563_vm3, %v3155_v26, %v3145_v0  ;;  %v730_v6 = vsel %vm563_vm3, %v3146_v25, %v3156_v3  ;;  %v664_v37 = vsel %vm632_vm4, %v3151_v46, %v3160_v4  ;;  %s3452_s20 = scalar_lea.vmem %s4870_s15, 1024 }
 0x1f6   : > { %v727_v21 = vpop.permute.xlu1 %726  ;;  %v3164_v61 = vpop.permute.xlu0 %3163  ;;  %v2896_v9 = vpack.c.bf16 %v728_v19, %v661_v59  ;;  %v2948_v16 = vpack.c.bf16 %v730_v6, %v663_v36  ;;  %p3453_p4 = scmp.ne.s32.totalorder %s4870_s15, %s3452_s20 }
 0x1f7   : > { %v731_v22 = vsel %vm563_vm3, %v3156_v3, %v727_v21  ;;  %v3166_v60 = vunpack.i.h.bf16 %v3164_v61  ;;  %v3165_v7 = vunpack.i.l.bf16 %v3164_v61 }
 0x1f8   : > { %v2946_v18 = vpack.c.bf16 %v731_v22, %v664_v37  ;;  %2897 = vmatpush1.bf16.msra.mxu0 %v2896_v9  ;;  %2235 = vperm.xlu1 %3352, %v2231_v20   ;;  %p3454_p6 = pnand %p3453_p4, %p3680_p12 }
 0x1f9   : > { %2240 = vperm.xlu0 %3353, %v2232_v52   ;;  %v796_v2 = vsel %vm494_vm2, %v3165_v7, %v3166_v60 }
 0x1fa   : > { %v3169_v42 = vpop.permute.xlu1 %3168  ;;  %v3174_v54 = vpop.permute.xlu0 %3173  ;;  %2947 = vmatprep.subr.bf16.mxu1 %v2946_v18  ;;  %v1218_v18 = vld [vmem:[#allocation7 + $0x25] ss:$8 sm:$0xf]  ;;  %p3455_p8 = pneg %p3454_p6 }
 0x1fb   : > { %v3171_v11 = vunpack.i.h.bf16 %v3169_v42  ;;  %v3170_v33 = vunpack.i.l.bf16 %v3169_v42  ;;  %2949 = vmatpush1.bf16.msra.mxu1 %v2948_v16  ;;  %v3175_v49 = vunpack.i.l.bf16 %v3174_v54  ;;  %v3176_v56 = vunpack.i.h.bf16 %v3174_v54  ;;  %v5036_v54 = vld [vmem:[#allocation15_spill] sm:$0xff] }
 0x1fd   : > { %v863_v5 = vsel %vm425_vm1, %v3170_v33, %v3171_v11  ;;  %v795_v38 = vsel %vm494_vm2, %v3175_v49, %v3165_v7  ;;  %v797_v63 = vsel %vm494_vm2, %v3166_v60, %v3176_v56 }
 0x1fe   : > { %v3179_v44 = vpop.permute.xlu1 %3178  ;;  %v794_v27 = vpop.permute.xlu0 %793  ;;  %v2898_v30 = vpack.c.bf16 %v863_v5, %v796_v2 }
 0x1ff   : > { %v3181_v24 = vunpack.i.h.bf16 %v3179_v44  ;;  %v3180_v17 = vunpack.i.l.bf16 %v3179_v44  ;;  %v798_v23 = vsel %vm494_vm2, %v3176_v56, %v794_v27 }
 0x200   : > { %2899 = vmatprep.subr.bf16.mxu0 %v2898_v30 }
 0x201   : > { %v862_v41 = vsel %vm425_vm1, %v3180_v17, %v3170_v33  ;;  %v864_v62 = vsel %vm425_vm1, %v3171_v11, %v3181_v24  ;;  %v1227_v11 = vrot.slane %v1218_v18, %v5036_v54  ;;  %v5037_v17 = vld [vmem:[#allocation16_spill] sm:$0xff] }
 0x202   : > { %v861_v48 = vpop.permute.xlu1 %860  ;;  %v3184_v40 = vpop.permute.xlu0 %3183  ;;  %v2900_v53 = vpack.c.bf16 %v862_v41, %v795_v38  ;;  %v2952_v1 = vpack.c.bf16 %v864_v62, %v797_v63  ;;  %v1235_v56 = vrot.slane %v1218_v18, %v5037_v17  ;;  %v3390_v38 = vld [vmem:[%s3729_s23 + $0x8] sm:$0xff] }
 0x203   : > { %v865_v39 = vsel %vm425_vm1, %v3181_v24, %v861_v48  ;;  %v3186_v47 = vunpack.i.h.bf16 %v3184_v40  ;;  %v3185_v10 = vunpack.i.l.bf16 %v3184_v40  ;;  %v1241_v41 = vmul.f32 %v3390_v38, %v1227_v11 }
 0x204   : > { %v2950_v45 = vpack.c.bf16 %v865_v39, %v798_v23  ;;  %2901 = vmatpush1.bf16.msra.mxu0 %v2900_v53  ;;  %v5038_v23 = vld [vmem:[#allocation14_spill] sm:$0xff] }
 0x205   : > { %v930_v51 = vsel %vm356_vm0, %v3185_v10, %v3186_v47  ;;  %v1223_v39 = vrot.slane %v1218_v18, %v5038_v23 }
 0x206   : > { %v3189_v25 = vpop.permute.xlu1 %3188  ;;  %v3194_v0 = vpop.permute.xlu0 %3193  ;;  %2951 = vmatprep.subr.bf16.mxu1 %v2950_v45  ;;  %v5039_v45 = vld [vmem:[#allocation13_spill] sm:$0xff] }
 0x207   : > { %v3191_v43 = vunpack.i.h.bf16 %v3189_v25  ;;  %v3190_v29 = vunpack.i.l.bf16 %v3189_v25  ;;  %2953 = vmatpush1.bf16.msra.mxu1 %v2952_v1  ;;  %v3195_v34 = vunpack.i.l.bf16 %v3194_v0  ;;  %v3196_v50 = vunpack.i.h.bf16 %v3194_v0 }
 0x208   : > { %v1231_v63 = vrot.slane %v1218_v18, %v5039_v45 }
 0x209   : > { %v999_v32 = vsel %vm997_vm15, %v3190_v29, %v3191_v43  ;;  %v929_v8 = vsel %vm356_vm0, %v3195_v34, %v3185_v10  ;;  %v931_v61 = vsel %vm356_vm0, %v3186_v47, %v3196_v50 }
 0x20a   : > { %v3199_v13 = vpop.permute.xlu1 %3198  ;;  %v928_v55 = vpop.permute.xlu0 %927  ;;  %v2902_v15 = vpack.c.bf16 %v999_v32, %v930_v51  ;;  %v3391_v32 = vld [vmem:[%s3729_s23 + $0x18] sm:$0xff] }
 0x20b   : > { %v3201_v12 = vunpack.i.h.bf16 %v3199_v13  ;;  %v3200_v57 = vunpack.i.l.bf16 %v3199_v13  ;;  %v932_v19 = vsel %vm356_vm0, %v3196_v50, %v928_v55  ;;  %v1243_v13 = vmul.f32 %v3391_v32, %v1235_v56  ;;  %v3393_v50 = vld [vmem:[%s3729_s23 + $0x10] sm:$0xff] }
 0x20c   : > { %2903 = vmatprep.subr.bf16.mxu0 %v2902_v15 }
 0x20d   : > { %v998_v3 = vsel %vm997_vm15, %v3200_v57, %v3190_v29  ;;  %v1000_v59 = vsel %vm997_vm15, %v3191_v43, %v3201_v12 }
 0x20e   : > { %v996_v26 = vpop.permute.xlu1 %995  ;;  %v3204_v4 = vpop.permute.xlu0 %3203  ;;  %v2904_v46 = vpack.c.bf16 %v998_v3, %v929_v8  ;;  %v2956_v52 = vpack.c.bf16 %v1000_v59, %v931_v61  ;;  %v1242_v8 = vmul.f32 %v3393_v50, %v1231_v63 }
 0x20f   : > { %v1001_v20 = vsel %vm997_vm15, %v3201_v12, %v996_v26  ;;  %v3206_v9 = vunpack.i.h.bf16 %v3204_v4  ;;  %v3205_v6 = vunpack.i.l.bf16 %v3204_v4  ;;  %v3392_v12 = vld [vmem:[%s3729_s23] sm:$0xff]  ;;  %s3546_s23 = smov [#allocation9]  }
 0x210   : > { %v2954_v21 = vpack.c.bf16 %v1001_v20, %v932_v19  ;;  %2905 = vmatpush1.bf16.msra.mxu0 %v2904_v46  ;;  %v1240_v57 = vmul.f32 %v3392_v12, %v1223_v39  ;;  %s3456_s11 = sshll.u32 %s3546_s23, 4  ;;  %s3457_s11 = int_to_ptr.vmem [resolvable:$false] %s3456_s11 }
 0x211   : > { %v1068_v16 = vsel %vm1066_vm9, %v3205_v6, %v3206_v9  ;;  %s3458_s17 = scalar_lea.vmem %s3457_s11, 2048  ;;  %p3459_p10 = scmp.lt.s32.totalorder %s4870_s15, %s3457_s11 }
 0x212   : > { %v3209_v37 = vpop.permute.xlu1 %3208  ;;  %v3214_v22 = vpop.permute.xlu0 %3213  ;;  %2955 = vmatprep.subr.bf16.mxu1 %v2954_v21  ;;  %p3460_p13 = scmp.lt.s32.totalorder %s3458_s17, %s3452_s20 }
 0x213   : > { %v3211_v36 = vunpack.i.h.bf16 %v3209_v37  ;;  %v3210_v60 = vunpack.i.l.bf16 %v3209_v37  ;;  %2957 = vmatpush1.bf16.msra.mxu1 %v2956_v52  ;;  %v3215_v7 = vunpack.i.l.bf16 %v3214_v22  ;;  %v3216_v27 = vunpack.i.h.bf16 %v3214_v22 }
 0x214   : > { %p3461_p3 = por %p3460_p13, %p3459_p10 }
 0x215   : > { %v1137_v42 = vsel %vm1135_vm14, %v3210_v60, %v3211_v36  ;;  %v1067_v30 = vsel %vm1066_vm9, %v3215_v7, %v3205_v6  ;;  %v1069_v43 = vsel %vm1066_vm9, %v3206_v9, %v3216_v27 }
 0x216   : > { %v3219_v33 = vpop.permute.xlu1 %3218  ;;  %v1065_v49 = vpop.permute.xlu0 %1064  ;;  %v2906_v2 = vpack.c.bf16 %v1137_v42, %v1068_v16  ;;  %p3462_p7 = pnand %p3461_p3, %p3455_p8 }
 0x217   : > { %v3221_v5 = vunpack.i.h.bf16 %v3219_v33  ;;  %v3220_v44 = vunpack.i.l.bf16 %v3219_v33  ;;  %v1070_v47 = vsel %vm1066_vm9, %v3216_v27, %v1065_v49  ;;  %vm5040_vm9 = vcmask 973824  }
 0x218   : > { %2907 = vmatprep.subr.bf16.mxu0 %v2906_v2 }
 0x219   : > { %v1136_v24 = vsel %vm1135_vm14, %v3220_v44, %v3210_v60  ;;  %v1138_v62 = vsel %vm1135_vm14, %v3211_v36, %v3221_v5 }
 0x21a   : > { %v1134_v48 = vpop.permute.xlu1 %1133  ;;  %v3224_v40 = vpop.permute.xlu0 %3223  ;;  %v2908_v53 = vpack.c.bf16 %v1136_v24, %v1067_v30  ;;  %v2960_v29 = vpack.c.bf16 %v1138_v62, %v1069_v43 }
 0x21b   : > { %v1139_v10 = vsel %vm1135_vm14, %v3221_v5, %v1134_v48  ;;  %v3226_v1 = vunpack.i.h.bf16 %v3224_v40  ;;  %v3225_v25 = vunpack.i.l.bf16 %v3224_v40 }
 0x21c   : > { %v2958_v0 = vpack.c.bf16 %v1139_v10, %v1070_v47  ;;  %2909 = vmatpush1.bf16.msra.mxu0 %v2908_v53 }
 0x21d   : > { %v1206_v34 = vsel %vm1204_vm13, %v3225_v25, %v3226_v1 }
 0x21e   : > { %v3229_v51 = vpop.permute.xlu1 %3228  ;;  %v1203_v55 = vpop.permute.xlu0 %1202  ;;  %2959 = vmatprep.subr.bf16.mxu1 %v2958_v0  ;;  %v2910_v15 = vpack.c.bf16 %v1241_v41, %v1206_v34 }
 0x21f   : > { %v3231_v3 = vunpack.i.h.bf16 %v3229_v51  ;;  %v3230_v26 = vunpack.i.l.bf16 %v3229_v51  ;;  %2961 = vmatpush1.bf16.msra.mxu1 %v2960_v29 }
 0x220   : > { %2911 = vmatprep.subr.bf16.mxu0 %v2910_v15 }
 0x221   : > { %v1208_v4 = vsel %vm1204_vm13, %v3231_v3, %v1203_v55  ;;  %v1205_v46 = vsel %vm1204_vm13, %v3230_v26, %v3225_v25  ;;  %v1207_v59 = vsel %vm1204_vm13, %v3226_v1, %v3231_v3  ;;  %vm5043_vm13 = vmmov %vm5040_vm9  ;;  %v3101_v26 = vunpack.i.h.bf16 %v4608_v14 }
 0x222   : > { %v2962_v19 = vpack.c.bf16 %v1243_v13, %v1208_v4  ;;  %v3234_v20 = vpop.permute.xlu1 %3233  ;;  %v3239_v21 = vpop.permute.xlu0 %3238  ;;  %v2912_v61 = vpack.c.bf16 %v1240_v57, %v1205_v46  ;;  %v2964_v9 = vpack.c.bf16 %v1242_v8, %v1207_v59  ;;  %v3106_v4 = vunpack.i.h.bf16 %v4640_v58 }
 0x223   : > { %v3236_v6 = vunpack.i.h.bf16 %v3234_v20  ;;  %v3235_v52 = vunpack.i.l.bf16 %v3234_v20  ;;  %v3241_v37 = vunpack.i.h.bf16 %v3239_v21  ;;  %v3240_v22 = vunpack.i.l.bf16 %v3239_v21 }
 0x224   : > { %2913 = vmatpush1.bf16.msra.mxu0 %v2912_v61  ;;  %2963 = vmatprep.subr.bf16.mxu1 %v2962_v19 }
 0x225   : > { %2965 = vmatpush1.bf16.msra.mxu1 %v2964_v9  ;;  %v1304_v18 = vsel %vm1175_vm12, %v3235_v52, %v3236_v6  ;;  %v1371_v36 = vsel %vm1106_vm11, %v3240_v22, %v3241_v37 }
 0x226   : > { %v3244_v60 = vpop.permute.xlu1 %3243  ;;  %v3249_v7 = vpop.permute.xlu0 %3248  ;;  %v2914_v16 = vpack.c.bf16 %v1371_v36, %v1304_v18 }
 0x227   : > { %v3246_v42 = vunpack.i.h.bf16 %v3244_v60  ;;  %v3245_v54 = vunpack.i.l.bf16 %v3244_v60  ;;  %v3251_v11 = vunpack.i.h.bf16 %v3249_v7  ;;  %v3250_v33 = vunpack.i.l.bf16 %v3249_v7 }
 0x228   : > { %2915 = vmatprep.subr.bf16.mxu0 %v2914_v16 }
 0x229   : > { %v1303_v49 = vsel %vm1175_vm12, %v3245_v54, %v3235_v52  ;;  %v1370_v2 = vsel %vm1106_vm11, %v3250_v33, %v3240_v22  ;;  %v1305_v30 = vsel %vm1175_vm12, %v3236_v6, %v3246_v42  ;;  %v1372_v24 = vsel %vm1106_vm11, %v3241_v37, %v3251_v11 }
 0x22a   : > { %v1302_v5 = vpop.permute.xlu1 %1301  ;;  %v1369_v44 = vpop.permute.xlu0 %1368  ;;  %v2916_v27 = vpack.c.bf16 %v1370_v2, %v1303_v49  ;;  %v2968_v41 = vpack.c.bf16 %v1372_v24, %v1305_v30  ;;  %v3131_v49 = vunpack.i.h.bf16 %v4670_v35  ;;  %v3136_v2 = vunpack.i.h.bf16 %v4691_v28 }
 0x22b   : > { %v1306_v17 = vsel %vm1175_vm12, %v3246_v42, %v1302_v5  ;;  %v1373_v56 = vsel %vm1106_vm11, %v3251_v11, %v1369_v44  ;;  %vm5041_vm11 = vmmov %vm5040_vm9 }
 0x22c   : > { %v2966_v38 = vpack.c.bf16 %v1373_v56, %v1306_v17  ;;  %2917 = vmatpush1.bf16.msra.mxu0 %v2916_v27  ;;  %vm5042_vm12 = vmmov %vm5040_vm9 }
 0x22e   : > { %v3254_v48 = vpop.permute.xlu1 %3253  ;;  %v3259_v40 = vpop.permute.xlu0 %3258  ;;  %2967 = vmatprep.subr.bf16.mxu1 %v2966_v38 }
 0x22f   : > { %v3256_v53 = vunpack.i.h.bf16 %v3254_v48  ;;  %v3255_v62 = vunpack.i.l.bf16 %v3254_v48  ;;  %v3261_v23 = vunpack.i.h.bf16 %v3259_v40  ;;  %v3260_v39 = vunpack.i.l.bf16 %v3259_v40  ;;  %2969 = vmatpush1.bf16.msra.mxu1 %v2968_v41 }
 0x231   : > { %v1438_v45 = vsel %vm1037_vm10, %v3255_v62, %v3256_v53  ;;  %v1505_v63 = vsel %vm5040_vm9, %v3260_v39, %v3261_v23 }
 0x232   : > { %v3264_v47 = vpop.permute.xlu1 %3263  ;;  %v3269_v10 = vpop.permute.xlu0 %3268  ;;  %v2918_v1 = vpack.c.bf16 %v1505_v63, %v1438_v45 }
 0x233   : > { %v3266_v25 = vunpack.i.h.bf16 %v3264_v47  ;;  %v3265_v0 = vunpack.i.l.bf16 %v3264_v47  ;;  %v3271_v43 = vunpack.i.h.bf16 %v3269_v10  ;;  %v3270_v29 = vunpack.i.l.bf16 %v3269_v10 }
 0x234   : > { %2919 = vmatprep.subr.bf16.mxu0 %v2918_v1 }
 0x235   : > { %v1437_v34 = vsel %vm1037_vm10, %v3265_v0, %v3255_v62  ;;  %v1504_v51 = vsel %vm5041_vm11, %v3270_v29, %v3260_v39  ;;  %v1439_v15 = vsel %vm1037_vm10, %v3256_v53, %v3266_v25  ;;  %v1506_v12 = vsel %vm5042_vm12, %v3261_v23, %v3271_v43 }
 0x236   : > { %v1436_v32 = vpop.permute.xlu1 %1435  ;;  %v1503_v13 = vpop.permute.xlu0 %1502  ;;  %v2920_v55 = vpack.c.bf16 %v1504_v51, %v1437_v34  ;;  %v2972_v3 = vpack.c.bf16 %v1506_v12, %v1439_v15 }
 0x237   : > { %v1440_v57 = vsel %vm1037_vm10, %v3266_v25, %v1436_v32  ;;  %v1507_v50 = vsel %vm5043_vm13, %v3271_v43, %v1503_v13  ;;  %vm5044_vm10 = vcmask 588800   ;;  %v3161_v32 = vunpack.i.h.bf16 %v4713_v31 }
 0x238   : > { %v2970_v8 = vpack.c.bf16 %v1507_v50, %v1440_v57  ;;  %2921 = vmatpush1.bf16.msra.mxu0 %v2920_v55  ;;  %vm5045_vm14 = vmmov %vm5044_vm10 }
 0x239   : > { %vm5046_vm15 = vmmov %vm5044_vm10 }
 0x23a   : > { %v3274_v46 = vpop.permute.xlu1 %3273  ;;  %v3279_v59 = vpop.permute.xlu0 %3278  ;;  %2971 = vmatprep.subr.bf16.mxu1 %v2970_v8  ;;  %vm5047_vm9 = vmmov %vm5044_vm10 }
 0x23b   : > { %v3276_v19 = vunpack.i.h.bf16 %v3274_v46  ;;  %v3275_v20 = vunpack.i.l.bf16 %v3274_v46  ;;  %v3281_v21 = vunpack.i.h.bf16 %v3279_v59  ;;  %v3280_v61 = vunpack.i.l.bf16 %v3279_v59  ;;  %2973 = vmatpush1.bf16.msra.mxu1 %v2972_v3 }
 0x23d   : > { %v1572_v9 = vsel %vm385_vm8, %v3101_v26, %v3275_v20  ;;  %v1639_v6 = vsel %vm5044_vm10, %v3106_v4, %v3280_v61  ;;  %v1571_v52 = vsel %vm385_vm8, %v3276_v19, %v3101_v26  ;;  %v1638_v37 = vsel %vm5045_vm14, %v3281_v21, %v3106_v4 }
 0x23e   : > { %v3284_v22 = vpop.permute.xlu1 %3283  ;;  %v3289_v14 = vpop.permute.xlu0 %3288  ;;  %v2922_v18 = vpack.c.bf16 %v1639_v6, %v1572_v9  ;;  %v2924_v58 = vpack.c.bf16 %v1638_v37, %v1571_v52 }
 0x23f   : > { %v3286_v36 = vunpack.i.h.bf16 %v3284_v22  ;;  %v3285_v60 = vunpack.i.l.bf16 %v3284_v22  ;;  %v3291_v7 = vunpack.i.h.bf16 %v3289_v14  ;;  %v3290_v16 = vunpack.i.l.bf16 %v3289_v14 }
 0x240   : > { %2923 = vmatprep.subr.bf16.mxu0 %v2922_v18 }
 0x241   : > { %2925 = vmatpush1.bf16.msra.mxu0 %v2924_v58  ;;  %v1574_v42 = vsel %vm385_vm8, %v3285_v60, %v3286_v36  ;;  %v1641_v54 = vsel %vm5046_vm15, %v3290_v16, %v3291_v7  ;;  %v1573_v11 = vsel %vm385_vm8, %v3275_v20, %v3285_v60  ;;  %v1640_v33 = vsel %vm5047_vm9, %v3280_v61, %v3290_v16 }
 0x242   : > { %v3294_v5 = vpop.permute.xlu1 %3293  ;;  %v3299_v44 = vpop.permute.xlu0 %3298  ;;  %v2974_v27 = vpack.c.bf16 %v1641_v54, %v1574_v42  ;;  %v2976_v30 = vpack.c.bf16 %v1640_v33, %v1573_v11 }
 0x243   : > { %v3296_v24 = vunpack.i.h.bf16 %v3294_v5  ;;  %v3295_v17 = vunpack.i.l.bf16 %v3294_v5  ;;  %v3301_v56 = vunpack.i.h.bf16 %v3299_v44  ;;  %v3300_v38 = vunpack.i.l.bf16 %v3299_v44 }
 0x244   : > { %2975 = vmatprep.subr.bf16.mxu1 %v2974_v27 }
 0x245   : > { %2977 = vmatpush1.bf16.msra.mxu1 %v2976_v30  ;;  %v1706_v41 = vsel %vm523_vm6, %v3131_v49, %v3295_v17  ;;  %v1773_v48 = vsel %vm592_vm5, %v3136_v2, %v3300_v38  ;;  %v1705_v40 = vsel %vm523_vm6, %v3296_v24, %v3131_v49  ;;  %v1772_v35 = vsel %vm592_vm5, %v3301_v56, %v3136_v2 }
 0x246   : > { %v3304_v53 = vpop.permute.xlu1 %3303  ;;  %v3309_v28 = vpop.permute.xlu0 %3308  ;;  %v2926_v62 = vpack.c.bf16 %v1773_v48, %v1706_v41  ;;  %v2928_v23 = vpack.c.bf16 %v1772_v35, %v1705_v40 }
 0x247   : > { %v3306_v39 = vunpack.i.h.bf16 %v3304_v53  ;;  %v3305_v45 = vunpack.i.l.bf16 %v3304_v53  ;;  %v3311_v63 = vunpack.i.h.bf16 %v3309_v28  ;;  %v3310_v47 = vunpack.i.l.bf16 %v3309_v28 }
 0x248   : > { %2927 = vmatprep.subr.bf16.mxu0 %v2926_v62 }
 0x249   : > { %2929 = vmatpush1.bf16.msra.mxu0 %v2928_v23  ;;  %v1708_v10 = vsel %vm523_vm6, %v3305_v45, %v3306_v39  ;;  %v1775_v1 = vsel %vm592_vm5, %v3310_v47, %v3311_v63  ;;  %v1707_v25 = vsel %vm523_vm6, %v3295_v17, %v3305_v45  ;;  %v1774_v0 = vsel %vm592_vm5, %v3300_v38, %v3310_v47  ;;  %v2119_v47 = vld [vmem:[%s4916_s1] sm:$0xff] }
 0x24a   : > { %v3314_v43 = vpop.permute.xlu1 %3313  ;;  %v3319_v29 = vpop.permute.xlu0 %3318  ;;  %v2978_v34 = vpack.c.bf16 %v1775_v1, %v1708_v10  ;;  %v2980_v51 = vpack.c.bf16 %v1774_v0, %v1707_v25  ;;  %v2122_v10 = vld [vmem:[%s4916_s1 + $0x18] sm:$0xff] }
 0x24b   : > { %v3315_v13 = vunpack.i.l.bf16 %v3314_v43  ;;  %v3321_v55 = vunpack.i.h.bf16 %v3319_v29  ;;  %v3320_v15 = vunpack.i.l.bf16 %v3319_v29  ;;  %v3316_v12 = vunpack.i.h.bf16 %v3314_v43  ;;  %v2121_v29 = vld [vmem:[%s4916_s1 + $0x10] sm:$0xff] }
 0x24c   : > { %2979 = vmatprep.subr.bf16.mxu1 %v2978_v34 }
 0x24d   : > { %2981 = vmatpush1.bf16.msra.mxu1 %v2980_v51  ;;  %v1840_v57 = vsel %vm632_vm4, %v3161_v32, %v3315_v13  ;;  %v1907_v50 = vsel %vm563_vm3, %v3320_v15, %v3321_v55  ;;  %v1839_v31 = vsel %vm632_vm4, %v3316_v12, %v3161_v32 }
 0x24e   : > { %v3324_v8 = vpop.permute.xlu1 %3323  ;;  %v3329_v3 = vpop.permute.xlu0 %3328  ;;  %v2930_v26 = vpack.c.bf16 %v1907_v50, %v1840_v57 }
 0x24f   : > { %v3326_v4 = vunpack.i.h.bf16 %v3324_v8  ;;  %v3325_v46 = vunpack.i.l.bf16 %v3324_v8  ;;  %v3331_v59 = vunpack.i.h.bf16 %v3329_v3  ;;  %v3330_v19 = vunpack.i.l.bf16 %v3329_v3 }
 0x250   : > { %2931 = vmatprep.subr.bf16.mxu0 %v2930_v26 }
 0x251   : > { %v1906_v20 = vsel %vm563_vm3, %v3325_v46, %v3320_v15  ;;  %v1841_v6 = vsel %vm632_vm4, %v3315_v13, %v3330_v19  ;;  %v1908_v52 = vsel %vm563_vm3, %v3321_v55, %v3326_v4  ;;  %v1842_v37 = vsel %vm632_vm4, %v3330_v19, %v3331_v59 }
 0x252   : > { %v1905_v21 = vpop.permute.xlu1 %1904  ;;  %v3334_v61 = vpop.permute.xlu0 %3333  ;;  %v2932_v9 = vpack.c.bf16 %v1906_v20, %v1839_v31  ;;  %v2984_v36 = vpack.c.bf16 %v1908_v52, %v1841_v6 }
 0x253   : > { %v1909_v22 = vsel %vm563_vm3, %v3326_v4, %v1905_v21  ;;  %v3336_v18 = vunpack.i.h.bf16 %v3334_v61  ;;  %v3335_v58 = vunpack.i.l.bf16 %v3334_v61 }
 0x254   : > { %v2982_v14 = vpack.c.bf16 %v1909_v22, %v1842_v37  ;;  %2933 = vmatpush1.bf16.msra.mxu0 %v2932_v9  ;;  %v2414_v22 = vld [vmem:[%s4918_s3] sm:$0xff] }
 0x255   : > { %v1974_v11 = vsel %vm494_vm2, %v3335_v58, %v3336_v18 }
 0x256   : > { %v3339_v60 = vpop.permute.xlu1 %3338  ;;  %v3344_v7 = vpop.permute.xlu0 %3343  ;;  %2983 = vmatprep.subr.bf16.mxu1 %v2982_v14 }
 0x257   : > { %v3341_v16 = vunpack.i.h.bf16 %v3339_v60  ;;  %v3340_v42 = vunpack.i.l.bf16 %v3339_v60  ;;  %2985 = vmatpush1.bf16.msra.mxu1 %v2984_v36  ;;  %v3345_v54 = vunpack.i.l.bf16 %v3344_v7  ;;  %v3346_v30 = vunpack.i.h.bf16 %v3344_v7  ;;  %v2415_v36 = vld [vmem:[%s4918_s3 + $0x8] sm:$0xff] }
 0x259   : > { %v2041_v33 = vsel %vm425_vm1, %v3340_v42, %v3341_v16  ;;  %v1973_v24 = vsel %vm494_vm2, %v3345_v54, %v3335_v58  ;;  %v1975_v28 = vsel %vm494_vm2, %v3336_v18, %v3346_v30 }
 0x25a   : > { %v3349_v49 = vpop.permute.xlu1 %3348  ;;  %v1972_v2 = vpop.permute.xlu0 %1971  ;;  %v2934_v5 = vpack.c.bf16 %v2041_v33, %v1974_v11 }
 0x25b   : > { %v3351_v44 = vunpack.i.h.bf16 %v3349_v49  ;;  %v3350_v27 = vunpack.i.l.bf16 %v3349_v49  ;;  %v1976_v40 = vsel %vm494_vm2, %v3346_v30, %v1972_v2 }
 0x25c   : > { %2935 = vmatprep.subr.bf16.mxu0 %v2934_v5 }
 0x25d   : > { %v2040_v17 = vsel %vm425_vm1, %v3350_v27, %v3340_v42  ;;  %v2042_v48 = vsel %vm425_vm1, %v3341_v16, %v3351_v44 }
 0x25e   : > { %v2039_v56 = vpop.permute.xlu1 %2038  ;;  %v2100_v38 = vpop.permute.xlu0 %2099  ;;  %v2936_v41 = vpack.c.bf16 %v2040_v17, %v1973_v24  ;;  %v2988_v62 = vpack.c.bf16 %v2042_v48, %v1975_v28 }
 0x25f   : > { %v2043_v35 = vsel %vm425_vm1, %v3351_v44, %v2039_v56 }
 0x260   : > { %v2986_v53 = vpack.c.bf16 %v2043_v35, %v1976_v40  ;;  %2937 = vmatpush1.bf16.msra.mxu0 %v2936_v41 }
 0x262   : > { %v2102_v23 = vpop.permute.xlu1 %2101  ;;  %v2098_v39 = vpop.permute.xlu0 %2097  ;;  %2987 = vmatprep.subr.bf16.mxu1 %v2986_v53 }
 0x263   : > { %2989 = vmatpush1.bf16.msra.mxu1 %v2988_v62  ;;  %v2108_v45 = vsel %vm356_vm0, %v2100_v38, %v2102_v23  ;;  %v2107_v63 = vsel %vm356_vm0, %v2098_v39, %v2100_v38 }
 0x264   : > { %2302 = vmatprep.subr.mxu0 %v2108_v45  ;;  %v2629_v45 = vld [vmem:[%s4920_s5] sm:$0xff] }
 0x265   : > { %2303 = vmatpush1.msra.mxu0 %v2107_v63  ;;  %v2630_v63 = vld [vmem:[%s4920_s5 + $0x8] sm:$0xff] }
 0x266   : > { %v2104_v1 = vpop.permute.xlu1 %2103  ;;  %v2106_v25 = vpop.permute.xlu0 %2105  ;;  %2315 = vmatmul.mubr.f32.vlgmr.msra.gmra.mrb[0].mxu0 %v2119_v47 }
 0x267   : > { %v2110_v0 = vsel %vm356_vm0, %v2104_v1, %v2106_v25  ;;  %2842 = vmatprep.mubr.msk.f32.mxu0 %vm2243_vm7, %v2122_v10  ;;  %v2109_v43 = vsel %vm356_vm0, %v2102_v23, %v2104_v1  ;;  %vm2416_vm0 = vcmask 130048  }
 0x268   : > { %2379 = vmatprep.subr.mxu1 %v2110_v0 }
 0x269   : > { %2380 = vmatpush1.msra.mxu1 %v2109_v43 }
 0x26a   : > { %2321 = vmatmul.mubr.f32.gmra.mrb[2].mxu0 %v2121_v29  ;;  %2392 = vmatmul.mubr.f32.vlgmr.msra.gmra.mrb[0].mxu1 %v2119_v47 }
 0x26b   : > { %2844 = vmatprep.mubr.msk.f32.mxu1 %vm2243_vm7, %v2122_v10  ;;  %2876 = vmatprep.mubr.msk.f32.mxu0 %vm2416_vm0, %v2414_v22 }
 0x26e   : > { %2398 = vmatmul.mubr.f32.gmra.mrb[2].mxu1 %v2121_v29 }
 0x26f   : > { %2883 = vmatprep.mubr.msk.f32.mxu1 %vm2416_vm0, %v2414_v22 }
 0x277   : > { %v2236_v34 = vpop.permute.xlu1 %2235 }
 0x278   : > { %v2241_v15 = vpop.permute.xlu0 %2240 }
 0x339   : > { %v2316_v51 = vpop.f32.mrb[0].mxu0 }
 0x33a   : > { %v2317_v32 = vadd.f32 %v2316_v51, %v2236_v34  ;;  %v2318_v13 = vpop.f32.mrb[1].mxu0 }
 0x33b   : > { %v2319_v55 = vadd.f32 %v2318_v13, %v2236_v34  ;;  %v2650_v13 = vld [vmem:[%s4921_s6 + $0x8] sm:$0xff] }
 0x33d   : > { %v2404_v12 = vadd.f32 %v2319_v55, %v2317_v32  ;;  %v2322_v57 = vpop.f32.mrb[2].mxu0  ;;  %v2393_v50 = vpop.f32.mrb[0].mxu1 }
 0x33e   : > { %v2394_v8 = vadd.f32 %v2393_v50, %v2236_v34  ;;  %v2323_v3 = vadd.f32 %v2322_v57, %v2241_v15  ;;  %v2324_v26 = vpop.f32.mrb[3].mxu0  ;;  %v2395_v4 = vpop.f32.mrb[1].mxu1 }
 0x33f   : > { %v2325_v46 = vadd.f32 %v2324_v26, %v2241_v15  ;;  %v2396_v59 = vadd.f32 %v2395_v4, %v2236_v34 }
 0x340   : > { %v2405_v19 = vadd.f32 %v2404_v12, %v2394_v8 }
 0x341   : > { %v2409_v31 = vadd.f32 %v2325_v46, %v2323_v3  ;;  %v2399_v20 = vpop.f32.mrb[2].mxu1 }
 0x342   : > { %v2406_v21 = vadd.f32 %v2405_v19, %v2396_v59  ;;  %v2400_v61 = vadd.f32 %v2399_v20, %v2241_v15  ;;  %v2401_v9 = vpop.f32.mrb[3].mxu1 }
 0x343   : > { %v2402_v6 = vadd.f32 %v2401_v9, %v2241_v15 }
 0x344   : > { %v2410_v52 = vadd.f32 %v2409_v31, %v2400_v61  ;;  %2407 = vadd.xlane.f32.xlu1 %v2406_v21 }
 0x346   : > { %v2411_v37 = vadd.f32 %v2410_v52, %v2402_v6 }
 0x348   : > { %2412 = vadd.xlane.f32.xlu0 %v2411_v37 }
 0x3d1   : > { %v2408_v14 = vpop.xlane.xlu1 %2407 }
 0x3d5   : > { %v2413_v18 = vpop.xlane.xlu0 %2412 }
 0x3d6   : > { %v2990_v58 = vpack.c.bf16 %v2413_v18, %v2408_v14 }
 0x3d8   : > { %2991 = vmatprep.subr.bf16.mxu0 %v2990_v58 }
 0x3d9   : > { %2993 = vmatpush3.bf16.msra.mxu0 %v2990_v58 }
 0x3dc   : > { %2877 = vmatmul.mubr.msk.f32.vlgmr.msra.gmra.mrb[4].mxu0 %vm2416_vm0, %v2415_v36 }
 0x4af   : > { %v2878_v60 = vpop.f32.mrb[4].mxu0 }
 0x4b0   : > { %2505 = vperm.xlu0 %3353, %v2878_v60   ;;  %v2489_v7 = vpop.f32.mrb[5].mxu0 }
 0x4b1   : > { %2500 = vperm.xlu1 %3352, %v2489_v7  }
 0x52f   : > { %v2506_v16 = vpop.permute.xlu0 %2505 }
 0x530   : > { %v2512_v42 = vsub.f32 %v2323_v3, %v2506_v16  ;;  %v2513_v54 = vsub.f32 %v2325_v46, %v2506_v16  ;;  %v2514_v11 = vsub.f32 %v2400_v61, %v2506_v16  ;;  %v2501_v33 = vpop.permute.xlu1 %2500  ;;  %v2515_v44 = vsub.f32 %v2402_v6, %v2506_v16 }
 0x531   : > { %v2508_v49 = vsub.f32 %v2317_v32, %v2501_v33  ;;  %v2509_v2 = vsub.f32 %v2319_v55, %v2501_v33  ;;  %v2510_v5 = vsub.f32 %v2394_v8, %v2501_v33  ;;  %v2511_v24 = vsub.f32 %v2396_v59, %v2501_v33  ;;  %v2649_v32 = vld [vmem:[%s4921_s6] sm:$0xff] }
 0x532   : > { %v2520_v27 = vmul.f32 %v2512_v42, %v2512_v42  ;;  %v2521_v30 = vmul.f32 %v2513_v54, %v2513_v54  ;;  %v2522_v38 = vmul.f32 %v2514_v11, %v2514_v11  ;;  %v2523_v35 = vmul.f32 %v2515_v44, %v2515_v44 }
 0x533   : > { %v2516_v17 = vmul.f32 %v2508_v49, %v2508_v49  ;;  %v2517_v56 = vmul.f32 %v2509_v2, %v2509_v2  ;;  %v2518_v48 = vmul.f32 %v2510_v5, %v2510_v5  ;;  %v2519_v28 = vmul.f32 %v2511_v24, %v2511_v24 }
 0x534   : > { %v2529_v41 = vadd.f32 %v2521_v30, %v2520_v27 }
 0x535   : > { %v2524_v40 = vadd.f32 %v2517_v56, %v2516_v17 }
 0x536   : > { %v2530_v53 = vadd.f32 %v2529_v41, %v2522_v38 }
 0x537   : > { %v2525_v62 = vadd.f32 %v2524_v40, %v2518_v48 }
 0x538   : > { %v2531_v23 = vadd.f32 %v2530_v53, %v2523_v35 }
 0x539   : > { %v2526_v39 = vadd.f32 %v2525_v62, %v2519_v28 }
 0x53a   : > { %2532 = vadd.xlane.f32.xlu0 %v2531_v23 }
 0x53b   : > { %2527 = vadd.xlane.f32.xlu1 %v2526_v39 }
 0x54c   : > { %2633 = vperm.xlu1 %3352, %v2629_v45  }
 0x550   : > { %2638 = vperm.xlu1 %3352, %v2630_v63  }
 0x5c7   : > { %v2533_v47 = vpop.xlane.xlu0 %2532 }
 0x5c8   : > { %v2528_v10 = vpop.xlane.xlu1 %2527 }
 0x5c9   : > { %v2994_v1 = vpack.c.bf16 %v2533_v47, %v2528_v10 }
 0x5cb   : > { %2995 = vmatprep.subr.bf16.mxu1 %v2994_v1 }
 0x5cc   : > { %2997 = vmatpush3.bf16.msra.mxu1 %v2994_v1  ;;  %v2634_v55 = vpop.permute.xlu1 %2633 }
 0x5cf   : > { %2884 = vmatmul.mubr.msk.f32.vlgmr.msra.gmra.mrb[4].mxu1 %vm2416_vm0, %v2415_v36 }
 0x5d0   : > { %v2639_v15 = vpop.permute.xlu1 %2638 }
 0x6a2   : > { %v2885_v25 = vpop.f32.mrb[4].mxu1 }
 0x6a3   : > { %v2606_v0 = vadd.f32 1e-05, %v2885_v25  ;;  %v2600_v43 = vpop.f32.mrb[5].mxu1 }
 0x6a4   : > { %v2601_v29 = vadd.f32 1e-05, %v2600_v43 }
 0x6a5   : > { %3354 = vrsqrt.f32 %v2606_v0 }
 0x6a6   : > { %3356 = vrsqrt.f32 %v2601_v29 }
 0x6af   : > { %v3355_v34 = vpop.eup %3354 }
 0x6b0   : > { %v3357_v51 = vpop.eup %3356  ;;  %2618 = vperm.xlu0 %3353, %v3355_v34  }
 0x6b1   : > { %2613 = vperm.xlu1 %3352, %v3357_v51  }
 0x6b4   : > { %2653 = vperm.xlu0 %3353, %v2649_v32  }
 0x6b5   : > { %2658 = vperm.xlu1 %3352, %v2650_v13  }
 0x72f   : > { %v2619_v12 = vpop.permute.xlu0 %2618 }
 0x730   : > { %v2625_v57 = vmul.f32 %v2619_v12, %v2512_v42  ;;  %v2626_v50 = vmul.f32 %v2619_v12, %v2513_v54  ;;  %v2627_v8 = vmul.f32 %v2619_v12, %v2514_v11  ;;  %v2628_v3 = vmul.f32 %v2619_v12, %v2515_v44  ;;  %v2614_v26 = vpop.permute.xlu1 %2613 }
 0x731   : > { %v2621_v4 = vmul.f32 %v2614_v26, %v2508_v49  ;;  %v2622_v46 = vmul.f32 %v2614_v26, %v2509_v2  ;;  %v2623_v59 = vmul.f32 %v2614_v26, %v2510_v5  ;;  %v2624_v19 = vmul.f32 %v2614_v26, %v2511_v24 }
 0x732   : > { %v2645_v31 = vmul.f32 %v2639_v15, %v2625_v57  ;;  %v2646_v20 = vmul.f32 %v2639_v15, %v2626_v50  ;;  %v2647_v21 = vmul.f32 %v2639_v15, %v2627_v8  ;;  %v2648_v22 = vmul.f32 %v2639_v15, %v2628_v3 }
 0x733   : > { %v2654_v61 = vpop.permute.xlu0 %2653  ;;  %v2641_v9 = vmul.f32 %v2634_v55, %v2621_v4  ;;  %v2642_v6 = vmul.f32 %v2634_v55, %v2622_v46  ;;  %v2643_v52 = vmul.f32 %v2634_v55, %v2623_v59  ;;  %v2644_v37 = vmul.f32 %v2634_v55, %v2624_v19 }
 0x734   : > { %v2659_v14 = vpop.permute.xlu1 %2658 }
 0x735   : > { %v2661_v18 = vadd.f32 %v2654_v61, %v2641_v9  ;;  %v2662_v58 = vadd.f32 %v2654_v61, %v2642_v6  ;;  %v2663_v36 = vadd.f32 %v2654_v61, %v2643_v52  ;;  %v2664_v60 = vadd.f32 %v2654_v61, %v2644_v37 }
 0x736   : > { %v2665_v7 = vadd.f32 %v2659_v14, %v2645_v31  ;;  %v4856_v16 = vadd.f32 %v2659_v14, %v2646_v20  ;;  %v2667_v33 = vadd.f32 %v2659_v14, %v2647_v21  ;;  %v4858_v2 = vadd.f32 %v2659_v14, %v2648_v22 }
 0x737   : > { %v2849_v42 = vmul.f32 -1.442695, %v2661_v18  ;;  %v2850_v54 = vmul.f32 -1.442695, %v2662_v58  ;;  %v2851_v11 = vmul.f32 -1.442695, %v2663_v36 }
 0x738   : > { %v2852_v49 = vmul.f32 -1.442695, %v2664_v60  ;;  %v2853_v5 = vmul.f32 -1.442695, %v2665_v7  ;;  %v2854_v44 = vmul.f32 -1.442695, %v4856_v16 }
 0x739   : > { %3358 = vpow2.f32 %v2849_v42  ;;  %v2855_v27 = vmul.f32 -1.442695, %v2667_v33  ;;  %v2856_v30 = vmul.f32 -1.442695, %v4858_v2 }
 0x73a   : > { %3360 = vpow2.f32 %v2850_v54 }
 0x73b   : > { %3362 = vpow2.f32 %v2851_v11 }
 0x73c   : > { %3364 = vpow2.f32 %v2852_v49 }
 0x73d   : > { %3366 = vpow2.f32 %v2853_v5 }
 0x73e   : > { %3368 = vpow2.f32 %v2854_v44 }
 0x73f   : > { %3370 = vpow2.f32 %v2855_v27 }
 0x740   : > { %3372 = vpow2.f32 %v2856_v30 }
 0x743   : > { %v3359_v24 = vpop.eup %3358 }
 0x744   : > { %v3361_v17 = vpop.eup %3360  ;;  %v2693_v56 = vadd.f32 1.0, %v3359_v24 }
 0x745   : > { %v3363_v38 = vpop.eup %3362  ;;  %v2694_v41 = vadd.f32 1.0, %v3361_v17 }
 0x746   : > { %v3365_v48 = vpop.eup %3364  ;;  %v2695_v40 = vadd.f32 1.0, %v3363_v38  ;;  %3374 = vrcp.f32 %v2693_v56 }
 0x747   : > { %v3367_v35 = vpop.eup %3366  ;;  %v2696_v53 = vadd.f32 1.0, %v3365_v48  ;;  %3376 = vrcp.f32 %v2694_v41 }
 0x748   : > { %v3369_v28 = vpop.eup %3368  ;;  %3378 = vrcp.f32 %v2695_v40  ;;  %v2697_v62 = vadd.f32 1.0, %v3367_v35 }
 0x749   : > { %v3371_v23 = vpop.eup %3370  ;;  %3380 = vrcp.f32 %v2696_v53  ;;  %v2698_v39 = vadd.f32 1.0, %v3369_v28 }
 0x74a   : > { %v3373_v45 = vpop.eup %3372  ;;  %v2699_v63 = vadd.f32 1.0, %v3371_v23  ;;  %3382 = vrcp.f32 %v2697_v62 }
 0x74b   : > { %v2700_v47 = vadd.f32 1.0, %v3373_v45  ;;  %3384 = vrcp.f32 %v2698_v39 }
 0x74c   : > { %3386 = vrcp.f32 %v2699_v63 }
 0x74d   : > { %3388 = vrcp.f32 %v2700_v47 }
 0x750   : > { %v3375_v10 = vpop.eup %3374 }
 0x751   : > { %v3377_v1 = vpop.eup %3376  ;;  %v2717_v25 = vmul.f32 %v3375_v10, %v2661_v18 }
 0x752   : > { %v3379_v0 = vpop.eup %3378  ;;  %v2718_v43 = vmul.f32 %v3377_v1, %v2662_v58 }
 0x753   : > { %v3381_v29 = vpop.eup %3380  ;;  %v2719_v34 = vmul.f32 %v3379_v0, %v2663_v36  ;;  %2725 = vst [vmem:[%s309_s30] sm:$0xff] %v2717_v25 }
 0x754   : > { %v3383_v51 = vpop.eup %3382  ;;  %v2720_v32 = vmul.f32 %v3381_v29, %v2664_v60  ;;  %2726 = vst [vmem:[%s309_s30 + $0x8] sm:$0xff] %v2718_v43 }
 0x755   : > { %v3385_v13 = vpop.eup %3384  ;;  %2727 = vst [vmem:[%s309_s30 + $0x10] sm:$0xff] %v2719_v34  ;;  %v2721_v55 = vmul.f32 %v3383_v51, %v2665_v7 }
 0x756   : > { %v3387_v15 = vpop.eup %3386  ;;  %2728 = vst [vmem:[%s309_s30 + $0x18] sm:$0xff] %v2720_v32  ;;  %v2722_v12 = vmul.f32 %v3385_v13, %v4856_v16 }
 0x757   : > { %v3389_v57 = vpop.eup %3388  ;;  %v2723_v50 = vmul.f32 %v3387_v15, %v2667_v33  ;;  %2729 = vst [vmem:[%s309_s30 + $0x20] sm:$0xff] %v2721_v55 }
 0x758   : > { %v2724_v8 = vmul.f32 %v3389_v57, %v4858_v2  ;;  %2730 = vst [vmem:[%s309_s30 + $0x28] sm:$0xff] %v2722_v12 }
 0x759   : > { %2731 = vst [vmem:[%s309_s30 + $0x30] sm:$0xff] %v2723_v50 }
 0x75a   : > { %2732 = vst [vmem:[%s309_s30 + $0x38] sm:$0xff] %v2724_v8 }
 0x75b   : > { %3465 = shalt.err (!%p3462_p7)
}
 0x75c   : > { %s3466_s22 = scalar_lea.hbm %s4868_s29, 1024  ;;  %s3470_s30 = scalar_lea.hbm %s4922_s7, 2048 }
 0x75d   : > { %p3467_p9 = scmp.ne.s32.totalorder %s4868_s29, %s3466_s22  ;;  %p3471_p0 = scmp.lt.u32.totalorder %s4868_s29, %s4922_s7 }
 0x75e   : > { %p3472_p11 = scmp.lt.u32.totalorder %s3470_s30, %s3466_s22  ;;  %p3474_p4 = scmp.lt.u32.totalorder %s3466_s22, %s4868_s29 }
 0x75f   : > { %p3468_p2 = pnand %p3467_p9, %p3680_p12 }
 0x760   : > { %p3473_p1 = por %p3472_p11, %p3471_p0 }
 0x761   : > { %p3469_p5 = pneg %p3468_p2 }
 0x762   : > { %p3475_p6 = por %p3474_p4, %p3473_p1 }
 0x764   : > { %p3476_p8 = pnand %p3475_p6, %p3469_p5 }
 0x766   : > { %3479 = shalt.err (!%p3476_p8)
}
 0x767   : > { %s3547_s16 = smov 512   ;;  %s3548_s20 = smov 32  }
 0x768   : > { %3004 = dma.vmem_to_hbm [thread:$0]  (%p3680_p12), %s4870_s15, 1024, %s4868_s29, %s2734_s28, %s3547_s16, %s3547_s16, %s3548_s20  }
 0x769 PF: > { %s2762_s23 = sand.u32 1, %s3510_s24   ;;  %p5048_p10 = scmp.ne.s32.totalorder %s4967_s8, 0 }
 0x76a   : > { %p5049_p13 = scmp.ge.s32.totalorder %s3522_s27, 2  ;;  %s2763_s11 = scalar_lea.sflag [#allocation6], %s2762_s23 }
 0x76c   : > { %p3015_p3 = pnand %p5049_p13, %p5048_p10 }
 0x76e   : > { %3505 = dma.done.wait (!%p3015_p3), %s2763_s11, 1024  }
 0x76f   : > { %3507 = vsyncadd (!%p3015_p3), %s2763_s11, 4294966272  ;;  %p21_p7 = scmp.ge.s32.totalorder %s3645_s13, 4   ;;  %s5050_s24 = smov %s3514_s25 }
 0x770   : > { %s5051_s25 = smov %s3518_s26  ;;  %s5052_s26 = smov %s3676_s18 }
 0x771   : > { %s5053_s27 = smov %s3645_s13  ;;  %23 = sbr.rel (!%p21_p7) target bundleno = 6 (0x6), region = 123 }
 0x778   :  { %2768 = vsyncpa [#allocation5], 1 }
 0x779   :  { %2770 = vsyncpa [#allocation5 + $0x1], 1 }
 0x77a   :  { %2771 = vsyncpa [#allocation8], 1 }
 0x77b   :  { %2772 = vsyncpa [#allocation6], 1 }
 0x77c   :  { %2774 = vsyncpa [#allocation6 + $0x1], 1 }

</bundles_post_ra>
